<compile_context>
chip_gen: v5e
topology: v5e:2x2
jax: 0.10.0
libtpu: 0.0.40
codegen_flags: <defaults>
</compile_context>

<pallas_src>
import functools
import math

import jax
import jax.numpy as jnp
from jax.experimental import pallas as pl
from jax.experimental.pallas import tpu as pltpu

EPS = 1e-07          # used only by get_log_density in the original module
LOG_STD_MAX = 2.0
LOG_STD_MIN = -5.0
MEAN_MAX = 9.0
MEAN_MIN = -9.0
HIDDEN = 256

# Plain Python floats (NOT jnp scalars) so they become literals inside the
# kernel instead of captured traced constants.
_HALF_LOG_2PI = 0.5 * math.log(2.0 * math.pi)
_LOG_2 = math.log(2.0)


def _actor_kernel(state_ref, w1_ref, b1_ref, w2_ref, b2_ref,
                  wh_ref, bh_ref, eps_ref, out_ref, *, action_dim):
    """One batch tile of the Actor forward. Output slab = [action | tanh(mu) | logp]."""
    A = action_dim
    cdt = w1_ref.dtype  # matmul input dtype (bf16 fast path or f32); accum is f32
    # f32 path is for bit-parity testing only; production default is bf16 inputs
    # (native MXU pass) so HIGHEST's multi-pass algorithm is never hit there.
    prec = jax.lax.Precision.HIGHEST if cdt == jnp.float32 else None

    def mm(x, w):
        return jnp.dot(x.astype(cdt), w, preferred_element_type=jnp.float32,
                       precision=prec)

    x = state_ref[...]  # already in cdt (pre-cast in the wrapper)

    # fc1 + relu, keep the (TB, 256) intermediate in the compute dtype so it
    # lives/spills in VMEM as bf16 on the fast path.
    a1 = jnp.maximum(mm(x, w1_ref[...]) + b1_ref[...], 0.0).astype(cdt)
    # fc2 + relu
    a2 = jnp.maximum(mm(a1, w2_ref[...]) + b2_ref[...], 0.0).astype(cdt)

    # fused mu/sigma heads: single (256, 2A) matmul, slice on the lane axis
    h = mm(a2, wh_ref[...]) + bh_ref[...]
    mu = jnp.clip(h[:, :A], MEAN_MIN, MEAN_MAX)
    log_sigma = jnp.clip(h[:, A:], LOG_STD_MIN, LOG_STD_MAX)
    sigma = jnp.exp(log_sigma)

    # reparameterized sample through tanh (eps stays f32: it feeds logp directly)
    eps = eps_ref[...]
    z = mu + sigma * eps
    action = jnp.tanh(z)
    mode = jnp.tanh(mu)

    # Normal(mu, sigma).log_prob(z); (z - mu)/sigma == eps exactly by construction
    log_normal = -0.5 * (eps * eps) - log_sigma - _HALF_LOG_2PI
    # TanhTransform.log_abs_det_jacobian(z, tanh(z)) = 2*(log2 - z - softplus(-2z)).
    # Stable softplus written with basic ops (max/exp/log) for robust lowering;
    # log(1+t) vs log1p(t) differs by <1e-7 here since t = exp(-|2z|) <= 1.
    n2z = -2.0 * z
    softplus_m2z = jnp.maximum(n2z, 0.0) + jnp.log(1.0 + jnp.exp(-jnp.abs(n2z)))
    log_det = 2.0 * (_LOG_2 - z - softplus_m2z)

    logp = jnp.sum(log_normal - log_det, axis=-1, keepdims=True)

    # single lane-dense output store (lane concat rides the XLU)
    out_ref[...] = jnp.concatenate([action, mode, logp], axis=-1)


def _round_up(x, m):
    return (x + m - 1) // m * m


def prepare_actor_params(params, *, use_bf16=True):
    """Fuse the mu/sigma heads and cast weights once; cache the result."""
    if "wh" in params:
        return params
    wdt = jnp.bfloat16 if use_bf16 else jnp.float32
    return dict(
        w1=params["w1"].astype(wdt),
        b1=params["b1"].astype(jnp.float32),
        w2=params["w2"].astype(wdt),
        b2=params["b2"].astype(jnp.float32),
        wh=jnp.concatenate([params["wmu"], params["wsig"]], axis=1).astype(wdt),
        bh=jnp.concatenate([params["bmu"], params["bsig"]], axis=1).astype(jnp.float32),
    )


def _vmem_estimate_bytes(TB, S, A, in_itemsize):
    """Rough per-grid-step VMEM footprint (double-buffered I/O + intermediates)."""
    dbl = 2
    io = dbl * (TB * S * in_itemsize            # state tile
                + TB * A * 4                    # eps tile
                + TB * (2 * A + 1) * 4)         # output slab tile
    weights = dbl * ((S * HIDDEN + HIDDEN * HIDDEN + HIDDEN * 2 * A) * in_itemsize
                     + (2 * HIDDEN + 2 * A) * 4)
    interm = 2 * TB * HIDDEN * in_itemsize      # a1, a2 in compute dtype
    interm += TB * 2 * A * 4                    # fused head output (f32)
    temps = 8 * TB * A * 4                      # elementwise temporaries, rough
    return io + weights + interm + temps


def actor_forward(state, params, eps, *, block_b=8192, use_bf16=True):
    """Full Actor.forward as one gridded Pallas call.

    `params` may be the raw dict from init_actor_params (fused/cast on the fly)
    or the cached result of prepare_actor_params (preferred for repeated calls).
    Returns (action (B,A), logp_pi (B,), a_tanh_mode (B,A)) in float32.
    """
    B, S = state.shape
    p = prepare_actor_params(params, use_bf16=use_bf16)
    wdt = p["w1"].dtype
    A = p["wh"].shape[1] // 2

    # Batch tile: multiple of 8 sublanes, capped by block_b.
    TB = min(_round_up(block_b, 8), _round_up(B, 8))
    # v7x: make sure the batch grid has >= 2 tiles so both TensorCores get work
    # when dimension_semantics=("parallel",); harmless on single-TC chips.
    if B > 8:
        TB = min(TB, _round_up(-(-B // 2), 8))
    Bp = _round_up(B, TB)
    if Bp != B:
        state = jnp.pad(state, ((0, Bp - B), (0, 0)))
        eps = jnp.pad(eps, ((0, Bp - B), (0, 0)))

    out_w = 2 * A + 1  # [action | tanh(mu) | logp]
    grid = (Bp // TB,)

    # Scoped-VMEM budget: estimate + 2x margin, clamped to stay under v7x's
    # 64 MiB per-TC VMEM while comfortably above v5e's 16 MiB default.
    est = _vmem_estimate_bytes(TB, S, A, jnp.dtype(wdt).itemsize)
    vmem_limit = int(min(max(2 * est, 32 << 20), 56 << 20))

    def full(shape):
        return pl.BlockSpec(shape, lambda i: (0, 0))

    def batched(shape):
        return pl.BlockSpec(shape, lambda i: (i, 0))

    slab = pl.pallas_call(
        functools.partial(_actor_kernel, action_dim=A),
        out_shape=jax.ShapeDtypeStruct((Bp, out_w), jnp.float32),
        grid=grid,
        in_specs=[
            batched((TB, S)),
            full(p["w1"].shape), full(p["b1"].shape),
            full(p["w2"].shape), full(p["b2"].shape),
            full(p["wh"].shape), full(p["bh"].shape),
            batched((TB, A)),
        ],
        out_specs=batched((TB, out_w)),
        compiler_params=pltpu.CompilerParams(
            dimension_semantics=("parallel",),
            vmem_limit_bytes=vmem_limit),
    )(state.astype(wdt), p["w1"], p["b1"], p["w2"], p["b2"],
      p["wh"], p["bh"], eps.astype(jnp.float32))

    action = slab[:B, :A]
    mode = slab[:B, A:2 * A]
    logp = slab[:B, 2 * A]
    return action, logp, mode


def init_actor_params(key, state_dim, action_dim, hidden=HIDDEN):
    """Deterministic init mirroring nn.Linear default (uniform +/- 1/sqrt(fan_in))."""
    def linear(k, fan_in, fan_out):
        kw, kb = jax.random.split(k)
        bound = 1.0 / math.sqrt(fan_in)
        w = jax.random.uniform(kw, (fan_in, fan_out), jnp.float32, -bound, bound)
        b = jax.random.uniform(kb, (1, fan_out), jnp.float32, -bound, bound)
        return w, b

    k1, k2, k3, k4 = jax.random.split(key, 4)
    w1, b1 = linear(k1, state_dim, hidden)
    w2, b2 = linear(k2, hidden, hidden)
    wmu, bmu = linear(k3, hidden, action_dim)
    wsig, bsig = linear(k4, hidden, action_dim)
    return dict(w1=w1, b1=b1, w2=w2, b2=b2,
                wmu=wmu, bmu=bmu, wsig=wsig, bsig=bsig)


def _reference_forward(state, params, eps, *, use_bf16=False):
    """Pure-JAX reference. If use_bf16, emulate the kernel's bf16 matmul inputs."""
    in_dt = jnp.bfloat16 if use_bf16 else jnp.float32

    def mm(x, w):
        return jnp.dot(x.astype(in_dt).astype(jnp.float32),
                       w.astype(in_dt).astype(jnp.float32),
                       precision=jax.lax.Precision.HIGHEST)

    a1 = jnp.maximum(mm(state, params["w1"]) + params["b1"], 0.0)
    a2 = jnp.maximum(mm(a1, params["w2"]) + params["b2"], 0.0)
    mu = jnp.clip(mm(a2, params["wmu"]) + params["bmu"], MEAN_MIN, MEAN_MAX)
    log_sigma = jnp.clip(mm(a2, params["wsig"]) + params["bsig"],
                         LOG_STD_MIN, LOG_STD_MAX)
    sigma = jnp.exp(log_sigma)
    z = mu + sigma * eps
    action = jnp.tanh(z)
    log_normal = -0.5 * eps**2 - log_sigma - 0.5 * math.log(2.0 * math.pi)
    log_det = 2.0 * (math.log(2.0) - z - jax.nn.softplus(-2.0 * z))
    logp = jnp.sum(log_normal - log_det, axis=-1)
    return action, logp, jnp.tanh(mu)


if __name__ == "__main__":
    STATE_DIM, ACTION_DIM = 32, 8

    key = jax.random.PRNGKey(0)
    k_params, k_state, k_eps = jax.random.split(key, 3)
    params = init_actor_params(k_params, STATE_DIM, ACTION_DIM)

    # --- case 1: tiny batch, single block, f32 matmuls (tight parity check) ---
    B = 8
    state = jax.random.normal(k_state, (B, STATE_DIM), jnp.float32)
    eps = jax.random.normal(k_eps, (B, ACTION_DIM), jnp.float32)

    action, logp_pi, a_tanh_mode = jax.block_until_ready(
        actor_forward(state, params, eps, use_bf16=False))
    ra, rl, rm = _reference_forward(state, params, eps, use_bf16=False)

    assert action.shape == (B, ACTION_DIM)
    assert logp_pi.shape == (B,)
    assert a_tanh_mode.shape == (B, ACTION_DIM)
    assert jnp.allclose(action, ra, atol=1e-4, rtol=1e-4)
    assert jnp.allclose(a_tanh_mode, rm, atol=1e-4, rtol=1e-4)
    assert jnp.allclose(logp_pi, rl, atol=1e-3, rtol=1e-3)

    # --- case 2: multi-block grid + batch padding + bf16 fast path, cached params ---
    B2 = 20
    state2 = jax.random.normal(jax.random.PRNGKey(1), (B2, STATE_DIM), jnp.float32)
    eps2 = jax.random.normal(jax.random.PRNGKey(2), (B2, ACTION_DIM), jnp.float32)
    prepped = prepare_actor_params(params, use_bf16=True)  # fuse/cast once, reuse

    a2_, l2_, m2_ = jax.block_until_ready(
        actor_forward(state2, prepped, eps2, block_b=8, use_bf16=True))
    ra2, rl2, rm2 = _reference_forward(state2, params, eps2, use_bf16=True)

    assert a2_.shape == (B2, ACTION_DIM) and l2_.shape == (B2,)
    assert jnp.allclose(a2_, ra2, atol=2e-3, rtol=2e-3)
    assert jnp.allclose(m2_, rm2, atol=2e-3, rtol=2e-3)
    assert jnp.allclose(l2_, rl2, atol=2e-2, rtol=2e-2)

    print("KERNEL_OK")
</pallas_src>

<mosaic_0001>
module attributes {stable_mosaic.version = 11 : i64} {
  func.func @_actor_kernel(%arg0: i32, %arg1: memref<8x32xf32, #tpu.memory_space<vmem>>, %arg2: memref<32x256xf32, #tpu.memory_space<vmem>>, %arg3: memref<1x256xf32, #tpu.memory_space<vmem>>, %arg4: memref<256x256xf32, #tpu.memory_space<vmem>>, %arg5: memref<1x256xf32, #tpu.memory_space<vmem>>, %arg6: memref<256x16xf32, #tpu.memory_space<vmem>>, %arg7: memref<1x16xf32, #tpu.memory_space<vmem>>, %arg8: memref<8x8xf32, #tpu.memory_space<vmem>>, %arg9: memref<8x17xf32, #tpu.memory_space<vmem>>) attributes {dimension_semantics = [#tpu.dimension_semantics<parallel>], iteration_bounds = array<i64: 1>, scalar_prefetch = 0 : i64, scratch_operands = 0 : i64, tpu.core_type = #tpu.core_type<tc>, window_params = [{transform_indices = @transform_0, window_bounds = array<i64: 8, 32>}, {pipeline_mode = #tpu.pipeline_mode<synchronous>, transform_indices = @transform_1, window_bounds = array<i64: 32, 256>}, {pipeline_mode = #tpu.pipeline_mode<synchronous>, transform_indices = @transform_2, window_bounds = array<i64: 1, 256>}, {pipeline_mode = #tpu.pipeline_mode<synchronous>, transform_indices = @transform_3, window_bounds = array<i64: 256, 256>}, {pipeline_mode = #tpu.pipeline_mode<synchronous>, transform_indices = @transform_4, window_bounds = array<i64: 1, 256>}, {pipeline_mode = #tpu.pipeline_mode<synchronous>, transform_indices = @transform_5, window_bounds = array<i64: 256, 16>}, {pipeline_mode = #tpu.pipeline_mode<synchronous>, transform_indices = @transform_6, window_bounds = array<i64: 1, 16>}, {transform_indices = @transform_7, window_bounds = array<i64: 8, 8>}, {transform_indices = @transform_8, window_bounds = array<i64: 8, 17>}]} {
    %c0 = arith.constant 0 : index
    %c0_0 = arith.constant 0 : index
    %0 = vector.load %arg1[%c0, %c0_0] : memref<8x32xf32, #tpu.memory_space<vmem>>, vector<8x32xf32>
    %c0_1 = arith.constant 0 : index
    %c0_2 = arith.constant 0 : index
    %1 = vector.load %arg2[%c0_1, %c0_2] : memref<32x256xf32, #tpu.memory_space<vmem>>, vector<32x256xf32>
    %cst = arith.constant dense<0.000000e+00> : vector<8x256xf32>
    %2 = tpu.matmul %0, %1, %cst {dimension_numbers = #tpu.dot_dimension_numbers<[1], [0], [0], [1], [0, 0, 1, 1], [], []>, precision = #tpu.contract_precision<fp32>} : vector<8x32xf32>, vector<32x256xf32>, vector<8x256xf32> -> vector<8x256xf32>
    %c0_3 = arith.constant 0 : index
    %c0_4 = arith.constant 0 : index
    %3 = vector.load %arg3[%c0_3, %c0_4] : memref<1x256xf32, #tpu.memory_space<vmem>>, vector<1x256xf32>
    %4 = vector.broadcast %3 : vector<1x256xf32> to vector<8x256xf32>
    %5 = arith.addf %2, %4 : vector<8x256xf32>
    %cst_5 = arith.constant 0.000000e+00 : f32
    %6 = vector.broadcast %cst_5 : f32 to vector<8x256xf32>
    %7 = arith.maximumf %5, %6 : vector<8x256xf32>
    %c0_6 = arith.constant 0 : index
    %c0_7 = arith.constant 0 : index
    %8 = vector.load %arg4[%c0_6, %c0_7] : memref<256x256xf32, #tpu.memory_space<vmem>>, vector<256x256xf32>
    %cst_8 = arith.constant dense<0.000000e+00> : vector<8x256xf32>
    %9 = tpu.matmul %7, %8, %cst_8 {dimension_numbers = #tpu.dot_dimension_numbers<[1], [0], [0], [1], [0, 0, 1, 1], [], []>, precision = #tpu.contract_precision<fp32>} : vector<8x256xf32>, vector<256x256xf32>, vector<8x256xf32> -> vector<8x256xf32>
    %c0_9 = arith.constant 0 : index
    %c0_10 = arith.constant 0 : index
    %10 = vector.load %arg5[%c0_9, %c0_10] : memref<1x256xf32, #tpu.memory_space<vmem>>, vector<1x256xf32>
    %11 = vector.broadcast %10 : vector<1x256xf32> to vector<8x256xf32>
    %12 = arith.addf %9, %11 : vector<8x256xf32>
    %cst_11 = arith.constant 0.000000e+00 : f32
    %13 = vector.broadcast %cst_11 : f32 to vector<8x256xf32>
    %14 = arith.maximumf %12, %13 : vector<8x256xf32>
    %c0_12 = arith.constant 0 : index
    %c0_13 = arith.constant 0 : index
    %15 = vector.load %arg6[%c0_12, %c0_13] : memref<256x16xf32, #tpu.memory_space<vmem>>, vector<256x16xf32>
    %cst_14 = arith.constant dense<0.000000e+00> : vector<8x16xf32>
    %16 = tpu.matmul %14, %15, %cst_14 {dimension_numbers = #tpu.dot_dimension_numbers<[1], [0], [0], [1], [0, 0, 1, 1], [], []>, precision = #tpu.contract_precision<fp32>} : vector<8x256xf32>, vector<256x16xf32>, vector<8x16xf32> -> vector<8x16xf32>
    %c0_15 = arith.constant 0 : index
    %c0_16 = arith.constant 0 : index
    %17 = vector.load %arg7[%c0_15, %c0_16] : memref<1x16xf32, #tpu.memory_space<vmem>>, vector<1x16xf32>
    %18 = vector.broadcast %17 : vector<1x16xf32> to vector<8x16xf32>
    %19 = arith.addf %16, %18 : vector<8x16xf32>
    %20 = vector.extract_strided_slice %19 {offsets = [0, 0], sizes = [8, 8], strides = [1, 1]} : vector<8x16xf32> to vector<8x8xf32>
    %cst_17 = arith.constant -9.000000e+00 : f32
    %cst_18 = arith.constant 9.000000e+00 : f32
    %21 = vector.broadcast %cst_17 : f32 to vector<8x8xf32>
    %22 = arith.maximumf %21, %20 : vector<8x8xf32>
    %23 = vector.broadcast %cst_18 : f32 to vector<8x8xf32>
    %24 = arith.minimumf %23, %22 : vector<8x8xf32>
    %25 = vector.extract_strided_slice %19 {offsets = [0, 8], sizes = [8, 8], strides = [1, 1]} : vector<8x16xf32> to vector<8x8xf32>
    %cst_19 = arith.constant -5.000000e+00 : f32
    %cst_20 = arith.constant 2.000000e+00 : f32
    %26 = vector.broadcast %cst_19 : f32 to vector<8x8xf32>
    %27 = arith.maximumf %26, %25 : vector<8x8xf32>
    %28 = vector.broadcast %cst_20 : f32 to vector<8x8xf32>
    %29 = arith.minimumf %28, %27 : vector<8x8xf32>
    %30 = math.exp %29 : vector<8x8xf32>
    %c0_21 = arith.constant 0 : index
    %c0_22 = arith.constant 0 : index
    %31 = vector.load %arg8[%c0_21, %c0_22] : memref<8x8xf32, #tpu.memory_space<vmem>>, vector<8x8xf32>
    %32 = arith.mulf %30, %31 : vector<8x8xf32>
    %33 = arith.addf %24, %32 : vector<8x8xf32>
    %34 = math.tanh %33 : vector<8x8xf32>
    %35 = math.tanh %24 : vector<8x8xf32>
    %36 = arith.mulf %31, %31 : vector<8x8xf32>
    %cst_23 = arith.constant -5.000000e-01 : f32
    %37 = vector.broadcast %cst_23 : f32 to vector<8x8xf32>
    %38 = arith.mulf %37, %36 : vector<8x8xf32>
    %39 = arith.subf %38, %29 : vector<8x8xf32>
    %cst_24 = arith.constant 0.918938517 : f32
    %40 = vector.broadcast %cst_24 : f32 to vector<8x8xf32>
    %41 = arith.subf %39, %40 : vector<8x8xf32>
    %cst_25 = arith.constant -2.000000e+00 : f32
    %42 = vector.broadcast %cst_25 : f32 to vector<8x8xf32>
    %43 = arith.mulf %42, %33 : vector<8x8xf32>
    %cst_26 = arith.constant 0.000000e+00 : f32
    %44 = vector.broadcast %cst_26 : f32 to vector<8x8xf32>
    %45 = arith.maximumf %43, %44 : vector<8x8xf32>
    %46 = math.absf %43 : vector<8x8xf32>
    %cst_27 = arith.constant 0.000000e+00 : f32
    %47 = vector.broadcast %cst_27 : f32 to vector<8x8xf32>
    %48 = arith.subf %47, %46 : vector<8x8xf32>
    %49 = math.exp %48 : vector<8x8xf32>
    %cst_28 = arith.constant 1.000000e+00 : f32
    %50 = vector.broadcast %cst_28 : f32 to vector<8x8xf32>
    %51 = arith.addf %50, %49 : vector<8x8xf32>
    %52 = math.log %51 : vector<8x8xf32>
    %53 = arith.addf %45, %52 : vector<8x8xf32>
    %cst_29 = arith.constant 0.693147182 : f32
    %54 = vector.broadcast %cst_29 : f32 to vector<8x8xf32>
    %55 = arith.subf %54, %33 : vector<8x8xf32>
    %56 = arith.subf %55, %53 : vector<8x8xf32>
    %cst_30 = arith.constant 2.000000e+00 : f32
    %57 = vector.broadcast %cst_30 : f32 to vector<8x8xf32>
    %58 = arith.mulf %57, %56 : vector<8x8xf32>
    %59 = arith.subf %41, %58 : vector<8x8xf32>
    %cst_31 = arith.constant dense<0.000000e+00> : vector<8xf32>
    %60 = vector.multi_reduction <add>, %59, %cst_31 [1] : vector<8x8xf32> to vector<8xf32>
    %61 = vector.shape_cast %60 : vector<8xf32> to vector<8x1xf32>
    %62 = tpu.concatenate %34, %35, %61 in 1 : vector<8x8xf32>, vector<8x8xf32>, vector<8x1xf32> -> vector<8x17xf32>
    %c0_32 = arith.constant 0 : index
    %c0_33 = arith.constant 0 : index
    %63 = vector.load %arg9[%c0_32, %c0_33] : memref<8x17xf32, #tpu.memory_space<vmem>>, vector<8x17xf32>
    tpu.vector_store %arg9[%c0_32, %c0_33], %62 {strides = array<i32>} : memref<8x17xf32, #tpu.memory_space<vmem>>, vector<8x17xf32>,
    return
  }
  func.func @transform_0(%arg0: i32) -> (i32, i32) {
    %c0_i32 = arith.constant 0 : i32
    %c0_i32_0 = arith.constant 0 : i32
    return %arg0, %c0_i32 : i32, i32
  }
  func.func @transform_1(%arg0: i32) -> (i32, i32) {
    %c0_i32 = arith.constant 0 : i32
    %c0_i32_0 = arith.constant 0 : i32
    %c0_i32_1 = arith.constant 0 : i32
    return %c0_i32, %c0_i32_0 : i32, i32
  }
  func.func @transform_2(%arg0: i32) -> (i32, i32) {
    %c0_i32 = arith.constant 0 : i32
    %c0_i32_0 = arith.constant 0 : i32
    %c0_i32_1 = arith.constant 0 : i32
    return %c0_i32, %c0_i32_0 : i32, i32
  }
  func.func @transform_3(%arg0: i32) -> (i32, i32) {
    %c0_i32 = arith.constant 0 : i32
    %c0_i32_0 = arith.constant 0 : i32
    %c0_i32_1 = arith.constant 0 : i32
    return %c0_i32, %c0_i32_0 : i32, i32
  }
  func.func @transform_4(%arg0: i32) -> (i32, i32) {
    %c0_i32 = arith.constant 0 : i32
    %c0_i32_0 = arith.constant 0 : i32
    %c0_i32_1 = arith.constant 0 : i32
    return %c0_i32, %c0_i32_0 : i32, i32
  }
  func.func @transform_5(%arg0: i32) -> (i32, i32) {
    %c0_i32 = arith.constant 0 : i32
    %c0_i32_0 = arith.constant 0 : i32
    %c0_i32_1 = arith.constant 0 : i32
    return %c0_i32, %c0_i32_0 : i32, i32
  }
  func.func @transform_6(%arg0: i32) -> (i32, i32) {
    %c0_i32 = arith.constant 0 : i32
    %c0_i32_0 = arith.constant 0 : i32
    %c0_i32_1 = arith.constant 0 : i32
    return %c0_i32, %c0_i32_0 : i32, i32
  }
  func.func @transform_7(%arg0: i32) -> (i32, i32) {
    %c0_i32 = arith.constant 0 : i32
    %c0_i32_0 = arith.constant 0 : i32
    return %arg0, %c0_i32 : i32, i32
  }
  func.func @transform_8(%arg0: i32) -> (i32, i32) {
    %c0_i32 = arith.constant 0 : i32
    %c0_i32_0 = arith.constant 0 : i32
    return %arg0, %c0_i32 : i32, i32
  }
}

</mosaic_0001>

<bundles_post_ra>
// kernel: tpu_custom_call.1
= control target key start
LH: loop header
LB: loop body
LE: loop exit
PB: predicated region body
PF: predicated region fallthrough
CT: control target
= control target key end

     0   :  { %13 = vsyncpa [#allocation3], 0  ;;  %s4541_s0 = inlined_call_operand.vmem [shape: f32[8,32], index: 0, kind: input, shape index: {}]   ;;  %s4542_s1 = inlined_call_operand.vmem [shape: f32[32,256], index: 1, kind: input, shape index: {}]   ;;  %s4543_s2 = inlined_call_operand.vmem [shape: f32[1,256], index: 2, kind: input, shape index: {}]   ;;  %s4544_s3 = inlined_call_operand.hbm [shape: f32[256,256], index: 3, kind: input, shape index: {}]   ;;  %s4545_s4 = inlined_call_operand.vmem [shape: f32[1,256], index: 4, kind: input, shape index: {}]   ;;  %s4546_s5 = inlined_call_operand.vmem [shape: f32[256,16], index: 5, kind: input, shape index: {}]   ;;  %s4547_s6 = inlined_call_operand.vmem [shape: f32[1,16], index: 6, kind: input, shape index: {}]   ;;  %s4548_s7 = inlined_call_operand.vmem [shape: f32[8,8], index: 7, kind: input, shape index: {}]   ;;  %s4549_s8 = inlined_call_operand.hbm [shape: f32[8,17], index: 8, kind: output, shape index: {}]  }
   0x1   :  { %14 = vsyncpa [#allocation4], 0  ;;  %s25_s29 = sshll.u32 %s4544_s3, 4  ;;  %s2733_s30 = smov [#allocation2]   ;;  %s26_s29 = int_to_ptr.hbm [resolvable:$true] %s25_s29 }
   0x2   :  { %s27_s9 = sshll.u32 %s2733_s30, 4  ;;  %s2734_s10 = smov 256   ;;  %s28_s9 = int_to_ptr.vmem [resolvable:$true] %s27_s9 }
   0x3   :  { %s2735_s11 = smov 16  }
   0x4   :  { %33 = dma.hbm_to_vmem [thread:$0]  %s26_s29, 8192, %s28_s9, [#allocation3], %s2734_s10, %s2734_s10, %s2735_s11  }
   0x5   :  { %2729 = dma.done.wait [#allocation3], 8192  }
   0x6   :  { %2730 = vsyncadd [#allocation3], 4294959104  ;;  %vm61_vm0 = vcmask 261120   ;;  %v53_v0 = vld [vmem:[%s4542_s1 + $0x30] sm:$0xff]  ;;  %v51_v1 = vld [vmem:[%s4542_s1 + $0x20] sm:$0xff]  ;;  %s2736_s18 = smov 8  }
   0x7   :  { %v49_v2 = vld [vmem:[%s4542_s1 + $0x10] sm:$0xff]  ;;  %v2796_v3 = vand.u32 4294901760, %v53_v0  ;;  %v2798_v4 = vand.u32 4294901760, %v51_v1  ;;  %v47_v6 = vld [vmem:[%s4542_s1] sm:$0xff]  ;;  %v54_v8 = vld [vmem:[%s4542_s1 + $0x38] sm:$0xff]  ;;  %vm2632_vm1 = vcmask 64512  }
   0x8   :  { %v2800_v5 = vand.u32 4294901760, %v49_v2  ;;  %v46_v7 = vld [vmem:[%s4541_s0] sm:$0xff]  ;;  %v2811_v9 = vand.u32 4294901760, %v47_v6  ;;  %v2813_v11 = vand.u32 4294901760, %v54_v8  ;;  %v52_v12 = vld [vmem:[%s4542_s1 + $0x28] sm:$0xff]  ;;  %v50_v13 = vld [vmem:[%s4542_s1 + $0x18] sm:$0xff] }
   0x9   :  { %v63_v10 = vsel %vm61_vm0, %v46_v7, 0  ;;  %v107_v14 = vsub.f32 %v53_v0, %v2796_v3  ;;  %78 = vmatpush.msra.mxu0 %v2796_v3  ;;  %v113_v15 = vsub.f32 %v51_v1, %v2798_v4  ;;  %178 = vmatpush.msra.mxu3 %v2796_v3  ;;  %v48_v18 = vld [vmem:[%s4542_s1 + $0x8] sm:$0xff]  ;;  %v2836_v20 = vand.u32 4294901760, %v52_v12  ;;  %v467_v52 = vld [vmem:[#allocation2 + $0xf0] sm:$0xff]  ;;  %v465_v54 = vld [vmem:[#allocation2 + $0xe0] sm:$0xff]  ;;  %s2652_s24 = sshll.u32 %s4549_s8, 4  ;;  %s2653_s24 = int_to_ptr.hbm [resolvable:$true] %s2652_s24 }
   0xa   :  { %v2826_v16 = vsub.f32 %v49_v2, %v2800_v5  ;;  %v2828_v17 = vand.u32 4294901760, %v63_v10  ;;  %v2834_v19 = vsub.f32 %v47_v6, %v2811_v9  ;;  %v2839_v21 = vsub.f32 %v54_v8, %v2813_v11  ;;  %v463_v57 = vld [vmem:[#allocation2 + $0xd0] sm:$0xff]  ;;  %v461_v60 = vld [vmem:[#allocation2 + $0xc0] sm:$0xff] }
   0xb   :  { %v2841_v22 = vand.u32 4294901760, %v50_v13  ;;  %149 = vmatpush.msra.mxu2 %v107_v14  ;;  %80 = vmatpush.msra.mxu0 %v2798_v4  ;;  %v108_v23 = vand.u32 4294901760, %v107_v14  ;;  %v114_v24 = vand.u32 4294901760, %v113_v15  ;;  %v2852_v29 = vsub.f32 %v52_v12, %v2836_v20  ;;  %v459_v63 = vld [vmem:[#allocation2 + $0xb0] sm:$0xff]  ;;  %v453_v12 = vld [vmem:[#allocation2 + $0x80] sm:$0xff] }
   0xc   :  { %v2845_v25 = vsub.f32 %v63_v10, %v2828_v17  ;;  %v120_v26 = vand.u32 4294901760, %v2826_v16  ;;  %180 = vmatpush.msra.mxu3 %v2798_v4  ;;  %v126_v27 = vand.u32 4294901760, %v2834_v19  ;;  %v293_v28 = vand.u32 4294901760, %v2839_v21  ;;  %v455_v7 = vld [vmem:[#allocation2 + $0x90] sm:$0xff] }
   0xd   :  { %v2854_v30 = vand.u32 4294901760, %v48_v18  ;;  %152 = vmatpush.msra.mxu2 %v113_v15  ;;  %v109_v31 = vsub.f32 %v107_v14, %v108_v23  ;;  %82 = vmatpush.msra.mxu0 %v2800_v5  ;;  %v115_v32 = vsub.f32 %v113_v15, %v114_v24  ;;  %v299_v36 = vand.u32 4294901760, %v2852_v29 }
   0xe   :  { %v121_v33 = vsub.f32 %v2826_v16, %v120_v26  ;;  %v2859_v34 = vand.u32 4294901760, %v2845_v25  ;;  %182 = vmatpush.msra.mxu3 %v2800_v5  ;;  %v294_v35 = vsub.f32 %v2839_v21, %v293_v28  ;;  %v2867_v37 = vsub.f32 %v50_v13, %v2841_v22 }
   0xf   :  { %v110_v38 = vand.u32 4294901760, %v109_v31  ;;  %155 = vmatpush.msra.mxu2 %v2826_v16  ;;  %v116_v39 = vand.u32 4294901760, %v115_v32  ;;  %84 = vmatpush.msra.mxu0 %v2811_v9  ;;  %v127_v41 = vsub.f32 %v2834_v19, %v126_v27  ;;  %v300_v43 = vsub.f32 %v2852_v29, %v299_v36  ;;  %v451_v16 = vld [vmem:[#allocation2 + $0x70] sm:$0xff] }
  0x10   :  { %v88_v40 = vsub.f32 %v2845_v25, %v2859_v34  ;;  %184 = vmatpush.msra.mxu3 %v2811_v9  ;;  %v295_v42 = vand.u32 4294901760, %v294_v35  ;;  %v305_v44 = vand.u32 4294901760, %v2867_v37  ;;  %v122_v45 = vand.u32 4294901760, %v121_v33 }
  0x11   :  { %207 = vmatpush.msrb.mxu0 %v108_v23  ;;  %111 = vmatpush.msra.mxu1 %v110_v38  ;;  %v2883_v47 = vsub.f32 %v48_v18, %v2854_v30  ;;  %v301_v48 = vand.u32 4294901760, %v300_v43  ;;  %v128_v50 = vand.u32 4294901760, %v127_v41  ;;  %v2894_v56 = vand.u32 4294901760, %v467_v52  ;;  %v449_v23 = vld [vmem:[#allocation2 + $0x60] sm:$0xff] }
  0x12   :  { %158 = vmatpush.msra.mxu2 %v2834_v19  ;;  %v89_v46 = vand.u32 4294901760, %v88_v40  ;;  %188 = vmatmul.f32.vlgmr.msra.gmra.mxu3 %v2859_v34  ;;  %v306_v49 = vsub.f32 %v2867_v37, %v305_v44  ;;  %v2898_v59 = vand.u32 4294901760, %v465_v54  ;;  %v2905_v62 = vand.u32 4294901760, %v463_v57 }
  0x13   :  { %161 = vmatmul.f32.vlgmr.msra.gmra.mxu2 %v2845_v25  ;;  %117 = vmatpush.msra.mxu1 %v116_v39  ;;  %v311_v51 = vand.u32 4294901760, %v2883_v47  ;;  %v2903_v61 = vsub.f32 %v467_v52, %v2894_v56  ;;  %v2910_v0 = vand.u32 4294901760, %v461_v60  ;;  %v2919_v2 = vand.u32 4294901760, %v459_v63  ;;  %v443_v39 = vld [vmem:[#allocation2 + $0x30] sm:$0xff] }
  0x14   :  { %263 = vmatpush.msrb.mxu2 %v2813_v11  ;;  %90 = vmatmul.f32.vlgmr.msra.gmra.mxu0 %v89_v46  ;;  %v307_v55 = vand.u32 4294901760, %v306_v49  ;;  %v2915_v1 = vsub.f32 %v465_v54, %v2898_v59  ;;  %v2925_v6 = vsub.f32 %v463_v57, %v2905_v62  ;;  %v2950_v15 = vand.u32 4294901760, %v455_v7  ;;  %v439_v52 = vld [vmem:[#allocation2 + $0x10] sm:$0xff] }
  0x15   :  { %296 = vmatpush.msrb.mxu3 %v295_v42  ;;  %123 = vmatpush.msra.mxu1 %v122_v45  ;;  %v312_v53 = vsub.f32 %v2883_v47, %v311_v51  ;;  %v2988_v35 = vand.u32 4294901760, %v449_v23  ;;  %v3024_v49 = vand.u32 4294901760, %v443_v39  ;;  %vm2641_vm2 = vcmask 130048  }
  0x16   :  { %265 = vmatpush.msrb.mxu2 %v2836_v20  ;;  %211 = vmatpush.msrb.mxu0 %v114_v24  ;;  %v556_v8 = vand.u32 4294901760, %v2915_v1  ;;  %v562_v14 = vand.u32 4294901760, %v2925_v6  ;;  %vm2643_vm3 = vcmask 138240  }
  0x17   :  { %302 = vmatpush.msrb.mxu3 %v301_v48  ;;  %129 = vmatpush.msra.mxu1 %v128_v50  ;;  %v313_v58 = vand.u32 4294901760, %v312_v53  ;;  %v3012_v43 = vsub.f32 %v449_v23, %v2988_v35 }
  0x18   :  { %267 = vmatpush.msrb.mxu2 %v2841_v22  ;;  %131 = vmatmul.f32.vlgmr.msra.gmra.mxu1 %v2828_v17  ;;  %v557_v18 = vsub.f32 %v2915_v1, %v556_v8 }
  0x19   :  { %215 = vmatpush.msrb.mxu0 %v120_v26  ;;  %238 = vmatpush.msrb.mxu1 %v2796_v3  ;;  %v457_v3 = vld [vmem:[#allocation2 + $0xa0] sm:$0xff]  ;;  %v563_v26 = vsub.f32 %v2925_v6, %v562_v14 }
  0x1a   :  { %269 = vmatpush.msrb.mxu2 %v2854_v30  ;;  %308 = vmatpush.msrb.mxu3 %v307_v55  ;;  %v2936_v10 = vand.u32 4294901760, %v457_v3  ;;  %v558_v31 = vand.u32 4294901760, %v557_v18  ;;  %v604_v55 = vand.u32 4294901760, %v3012_v43  ;;  %v497_v18 = vld [vmem:[#allocation2 + $0x1e0] sm:$0xff] }
  0x1b   :  { %275 = vmatmul.f32.vlgmr.msrb.gmra.mxu2 %v89_v46  ;;  %240 = vmatpush.msrb.mxu1 %v2798_v4  ;;  %v550_v4 = vand.u32 4294901760, %v2903_v61 }
  0x1c   :  { %219 = vmatpush.msrb.mxu0 %v126_v27  ;;  %314 = vmatpush.msrb.mxu3 %v313_v58  ;;  %v2960_v19 = vsub.f32 %v457_v3, %v2936_v10  ;;  %v2973_v27 = vsub.f32 %v455_v7, %v2950_v15  ;;  %v437_v58 = vld [vmem:[#allocation2] sm:$0xff]  ;;  %v3046_v7 = vsub.f32 %v443_v39, %v3024_v49  ;;  %v3074_v39 = vand.u32 4294901760, %v497_v18 }
  0x1d   :  { %392 = vmatpush.msra.mxu2 %v293_v28  ;;  %242 = vmatpush.msrb.mxu1 %v2800_v5  ;;  %v2931_v5 = vsub.f32 %v461_v60, %v2910_v0  ;;  %v551_v13 = vsub.f32 %v2903_v61, %v550_v4  ;;  %v2975_v28 = vand.u32 4294901760, %v451_v16  ;;  %v499_v60 = vld [vmem:[#allocation2 + $0x1f0] sm:$0xff] }
  0x1e   :  { %221 = vmatmul.f32.vlgmr.msrb.gmra.mxu0 %v2828_v17  ;;  %316 = vmatmul.f32.vlgmr.msrb.gmra.mxu3 %v2828_v17  ;;  %v580_v32 = vand.u32 4294901760, %v2960_v19 }
  0x1f   :  { %334 = vmatpush.msra.mxu0 %v2839_v21  ;;  %244 = vmatpush.msrb.mxu1 %v2811_v9  ;;  %v2941_v9 = vsub.f32 %v459_v63, %v2919_v2  ;;  %v2962_v21 = vand.u32 4294901760, %v453_v12  ;;  %v552_v24 = vand.u32 4294901760, %v551_v13  ;;  %v3000_v38 = vsub.f32 %v451_v16, %v2975_v28 }
  0x20   :  { %396 = vmatpush.msra.mxu2 %v299_v36  ;;  %423 = vmatpush.msra.mxu3 %v2813_v11  ;;  %v445_v36 = vld [vmem:[#allocation2 + $0x40] sm:$0xff]  ;;  %v581_v41 = vsub.f32 %v2960_v19, %v580_v32 }
  0x21   :  { %246 = vmatmul.f32.vlgmr.msrb.gmra.mxu1 %v2828_v17  ;;  %337 = vmatpush.msra.mxu0 %v2852_v29  ;;  %v447_v29 = vld [vmem:[#allocation2 + $0x50] sm:$0xff]  ;;  %v2986_v33 = vsub.f32 %v453_v12, %v2962_v21  ;;  %v598_v48 = vand.u32 4294901760, %v3000_v38  ;;  %v3048_v12 = vand.u32 4294901760, %v439_v52 }
  0x22   :  { %363 = vmatpush.msra.mxu1 %v2813_v11  ;;  %400 = vmatpush.msra.mxu2 %v305_v44  ;;  %v568_v11 = vand.u32 4294901760, %v2931_v5  ;;  %v441_v44 = vld [vmem:[#allocation2 + $0x20] sm:$0xff]  ;;  %v582_v53 = vand.u32 4294901760, %v581_v41 }
  0x23   :  { %425 = vmatpush.msra.mxu3 %v2836_v20  ;;  %340 = vmatpush.msra.mxu0 %v2867_v37  ;;  %v586_v37 = vand.u32 4294901760, %v2973_v27  ;;  %v592_v42 = vand.u32 4294901760, %v2986_v33  ;;  %v599_v3 = vsub.f32 %v3000_v38, %v598_v48 }
  0x24   :  { %365 = vmatpush.msra.mxu1 %v2836_v20  ;;  %404 = vmatpush.msra.mxu2 %v311_v51  ;;  %v574_v20 = vand.u32 4294901760, %v2941_v9  ;;  %v3031_v51 = vand.u32 4294901760, %v441_v44 }
  0x25   :  { %427 = vmatpush.msra.mxu3 %v2841_v22  ;;  %406 = vmatmul.f32.vlgmr.msra.gmra.mxu2 %v2828_v17  ;;  %v593_v54 = vsub.f32 %v2986_v33, %v592_v42 }
  0x26   :  { %343 = vmatpush.msra.mxu0 %v2883_v47  ;;  %367 = vmatpush.msra.mxu1 %v2841_v22  ;;  %v569_v22 = vsub.f32 %v2931_v5, %v568_v11  ;;  %v587_v47 = vsub.f32 %v2973_v27, %v586_v37  ;;  %v3054_v16 = vsub.f32 %v441_v44, %v3031_v51  ;;  %v493_v44 = vld [vmem:[#allocation2 + $0x1c0] sm:$0xff] }
  0x27   :  { %429 = vmatpush.msra.mxu3 %v2854_v30  ;;  %346 = vmatmul.f32.vlgmr.msra.gmra.mxu0 %v2845_v25  ;;  %v564_v25 = vand.u32 4294901760, %v563_v26  ;;  %v594_v23 = vand.u32 4294901760, %v593_v54  ;;  %v3060_v26 = vand.u32 4294901760, %v437_v58 }
  0x28   :  { %431 = vmatmul.f32.vlgmr.msra.gmra.mxu3 %v2828_v17  ;;  %369 = vmatpush.msra.mxu1 %v2854_v30  ;;  %v2992_v17 = vand.u32 4294901760, %v447_v29  ;;  %v575_v30 = vsub.f32 %v2941_v9, %v574_v20  ;;  %v570_v40 = vand.u32 4294901760, %v569_v22  ;;  %v588_v63 = vand.u32 4294901760, %v587_v47 }
  0x29   :  { %651 = vmatpush.msrb.mxu2 %v2903_v61  ;;  %373 = vmatmul.f32.vlgmr.msra.gmra.mxu1 %v2859_v34  ;;  %v3004_v34 = vand.u32 4294901760, %v445_v36  ;;  %v4552_v41 = vand.u32 4294901760, %v3054_v16  ;;  %v3084_v47 = vsub.f32 %v437_v58, %v3060_v26 }
  0x2a   :  { %704 = vmatpush.msrb.mxu3 %v2894_v56  ;;  %553 = vmatpush.msrb.mxu1 %v552_v24  ;;  %v3017_v45 = vsub.f32 %v447_v29, %v2992_v17  ;;  %v576_v46 = vand.u32 4294901760, %v575_v30  ;;  %v605_v24 = vsub.f32 %v3012_v43, %v604_v55  ;;  %v3062_v29 = vand.u32 4294901760, %v499_v60 }
  0x2b   :  { %654 = vmatpush.msrb.mxu2 %v2915_v1  ;;  %508 = vmatpush.msrb.mxu0 %v2894_v56  ;;  %v3029_v50 = vsub.f32 %v445_v36, %v3004_v34  ;;  %v600_v36 = vand.u32 4294901760, %v599_v3  ;;  %v3072_v30 = vsub.f32 %v439_v52, %v3048_v12  ;;  %v4591_v1 = vand.u32 4294901760, %v3054_v16 }
  0x2c   :  { %706 = vmatpush.msrb.mxu3 %v2898_v59  ;;  %559 = vmatpush.msrb.mxu1 %v558_v31  ;;  %v4553_v57 = vand.u32 4294901760, %v3017_v45  ;;  %v495_v31 = vld [vmem:[#allocation2 + $0x1d0] sm:$0xff]  ;;  %v3087_v52 = vsub.f32 %v499_v60, %v3062_v29  ;;  %v3099_v60 = vsub.f32 %v497_v18, %v3074_v39  ;;  %v4588_v61 = vand.u32 4294901760, %v3017_v45 }
  0x2d   :  { %657 = vmatpush.msrb.mxu2 %v2925_v6  ;;  %510 = vmatpush.msrb.mxu0 %v2898_v59  ;;  %v4551_v13 = vand.u32 4294901760, %v3029_v50  ;;  %v4554_v58 = vand.u32 4294901760, %v3072_v30  ;;  %v4593_v6 = vand.u32 4294901760, %v3084_v47 }
  0x2e   :  { %708 = vmatpush.msrb.mxu3 %v2905_v62  ;;  %565 = vmatpush.msrb.mxu1 %v564_v25  ;;  %v611_v22 = vsub.f32 %v3017_v45, %v4553_v57  ;;  %v4550_v25 = vand.u32 4294901760, %v3046_v7 }
  0x2f   :  { %660 = vmatpush.msrb.mxu2 %v2931_v5  ;;  %512 = vmatpush.msrb.mxu0 %v2905_v62 }
  0x30   :  { %710 = vmatpush.msrb.mxu3 %v2910_v0  ;;  %571 = vmatpush.msrb.mxu1 %v570_v40  ;;  %v617_v40 = vsub.f32 %v3029_v50, %v4551_v13  ;;  %v612_v54 = vand.u32 4294901760, %v611_v22  ;;  %v623_v3 = vsub.f32 %v3046_v7, %v4550_v25  ;;  %v629_v22 = vsub.f32 %v3054_v16, %v4552_v41 }
  0x31   :  { %663 = vmatpush.msrb.mxu2 %v2941_v9  ;;  %514 = vmatpush.msrb.mxu0 %v2910_v0  ;;  %v4556_v25 = vand.u32 4294901760, %v3087_v52  ;;  %v4557_v41 = vand.u32 4294901760, %v3099_v60 }
  0x32   :  { %712 = vmatpush.msrb.mxu3 %v2919_v2  ;;  %577 = vmatpush.msrb.mxu1 %v576_v46  ;;  %v606_v46 = vand.u32 4294901760, %v605_v24  ;;  %v618_v24 = vand.u32 4294901760, %v617_v40  ;;  %v624_v40 = vand.u32 4294901760, %v623_v3 }
  0x33   :  { %666 = vmatpush.msrb.mxu2 %v2960_v19  ;;  %516 = vmatpush.msrb.mxu0 %v2919_v2  ;;  %v892_v3 = vsub.f32 %v3087_v52, %v4556_v25 }
  0x34   :  { %714 = vmatpush.msrb.mxu3 %v2936_v10  ;;  %583 = vmatpush.msrb.mxu1 %v582_v53  ;;  %v3089_v53 = vand.u32 4294901760, %v495_v31 }
  0x35   :  { %669 = vmatpush.msrb.mxu2 %v2973_v27  ;;  %518 = vmatpush.msrb.mxu0 %v2936_v10  ;;  %v893_v25 = vand.u32 4294901760, %v892_v3 }
  0x36   :  { %716 = vmatpush.msrb.mxu3 %v2950_v15  ;;  %589 = vmatpush.msrb.mxu1 %v588_v63  ;;  %v491_v63 = vld [vmem:[#allocation2 + $0x1b0] sm:$0xff]  ;;  %v3112_v18 = vsub.f32 %v495_v31, %v3089_v53  ;;  %v630_v31 = vand.u32 4294901760, %v629_v22  ;;  %v898_v22 = vsub.f32 %v3099_v60, %v4557_v41 }
  0x37   :  { %672 = vmatpush.msrb.mxu2 %v2986_v33  ;;  %520 = vmatpush.msrb.mxu0 %v2950_v15  ;;  %v3114_v13 = vand.u32 4294901760, %v491_v63 }
  0x38   :  { %718 = vmatpush.msrb.mxu3 %v2962_v21  ;;  %595 = vmatpush.msrb.mxu1 %v594_v23  ;;  %v3101_v23 = vand.u32 4294901760, %v493_v44  ;;  %v899_v41 = vand.u32 4294901760, %v898_v22 }
  0x39   :  { %675 = vmatpush.msrb.mxu2 %v3000_v38  ;;  %522 = vmatpush.msrb.mxu0 %v2962_v21  ;;  %v479_v38 = vld [vmem:[#allocation2 + $0x150] sm:$0xff] }
  0x3a   :  { %720 = vmatpush.msrb.mxu3 %v2975_v28  ;;  %601 = vmatpush.msrb.mxu1 %v600_v36  ;;  %v4555_v36 = vand.u32 4294901760, %v3084_v47  ;;  %v3124_v57 = vsub.f32 %v493_v44, %v3101_v23  ;;  %v3137_v44 = vsub.f32 %v491_v63, %v3114_v13 }
  0x3b   :  { %678 = vmatpush.msrb.mxu2 %v3012_v43  ;;  %524 = vmatpush.msrb.mxu0 %v2975_v28  ;;  %v3257_v43 = vand.u32 4294901760, %v479_v38 }
  0x3c   :  { %722 = vmatpush.msrb.mxu3 %v2988_v35  ;;  %607 = vmatpush.msrb.mxu1 %v606_v46  ;;  %v635_v46 = vsub.f32 %v3072_v30, %v4554_v58  ;;  %v903_v58 = vand.u32 4294901760, %v3112_v18 }
  0x3d   :  { %681 = vmatpush.msrb.mxu2 %v3017_v45  ;;  %526 = vmatpush.msrb.mxu0 %v2988_v35 }
  0x3e   :  { %724 = vmatpush.msrb.mxu3 %v2992_v17  ;;  %613 = vmatpush.msrb.mxu1 %v612_v54  ;;  %v641_v54 = vsub.f32 %v3084_v47, %v4555_v36  ;;  %v909_v36 = vand.u32 4294901760, %v3124_v57 }
  0x3f   :  { %684 = vmatpush.msrb.mxu2 %v3029_v50  ;;  %528 = vmatpush.msrb.mxu0 %v2992_v17 }
  0x40   :  { %726 = vmatpush.msrb.mxu3 %v3004_v34  ;;  %619 = vmatpush.msrb.mxu1 %v618_v24  ;;  %v636_v24 = vand.u32 4294901760, %v635_v46  ;;  %v642_v63 = vand.u32 4294901760, %v641_v54  ;;  %v915_v46 = vand.u32 4294901760, %v3137_v44 }
  0x41   :  { %687 = vmatpush.msrb.mxu2 %v3046_v7  ;;  %530 = vmatpush.msrb.mxu0 %v3004_v34 }
  0x42   :  { %728 = vmatpush.msrb.mxu3 %v3024_v49  ;;  %625 = vmatpush.msrb.mxu1 %v624_v40  ;;  %v904_v40 = vsub.f32 %v3112_v18, %v903_v58  ;;  %v916_v3 = vsub.f32 %v3137_v44, %v915_v46 }
  0x43   :  { %690 = vmatpush.msrb.mxu2 %v3054_v16  ;;  %532 = vmatpush.msrb.mxu0 %v3024_v49  ;;  %v475_v16 = vld [vmem:[#allocation2 + $0x130] sm:$0xff] }
  0x44   :  { %730 = vmatpush.msrb.mxu3 %v3031_v51  ;;  %631 = vmatpush.msrb.mxu1 %v630_v31  ;;  %v910_v31 = vsub.f32 %v3124_v57, %v909_v36  ;;  %v905_v54 = vand.u32 4294901760, %v904_v40 }
  0x45   :  { %693 = vmatpush.msrb.mxu2 %v3072_v30  ;;  %534 = vmatpush.msrb.mxu0 %v3031_v51 }
  0x46   :  { %732 = vmatpush.msrb.mxu3 %v3048_v12  ;;  %637 = vmatpush.msrb.mxu1 %v636_v24  ;;  %v911_v24 = vand.u32 4294901760, %v910_v31 }
  0x47   :  { %696 = vmatpush.msrb.mxu2 %v3084_v47  ;;  %536 = vmatpush.msrb.mxu0 %v3048_v12 }
  0x48   :  { %734 = vmatpush.msrb.mxu3 %v3060_v26  ;;  %643 = vmatpush.msrb.mxu1 %v642_v63  ;;  %v473_v63 = vld [vmem:[#allocation2 + $0x120] sm:$0xff] }
  0x49   :  { %849 = vmatpush.msra.mxu2 %v3062_v29  ;;  %538 = vmatpush.msrb.mxu0 %v3060_v26 }
  0x4a   :  { %894 = vmatpush.msra.mxu3 %v893_v25  ;;  %812 = vmatpush.msra.mxu1 %v2894_v56  ;;  %v917_v25 = vand.u32 4294901760, %v916_v3  ;;  %v489_v56 = vld [vmem:[#allocation2 + $0x1a0] sm:$0xff]  ;;  %v3288_v3 = vand.u32 4294901760, %v473_v63 }
  0x4b   :  { %851 = vmatpush.msra.mxu2 %v3074_v39  ;;  %745 = vmatpush.msra.mxu0 %v550_v4  ;;  %v487_v4 = vld [vmem:[#allocation2 + $0x190] sm:$0xff] }
  0x4c   :  { %900 = vmatpush.msra.mxu3 %v899_v41  ;;  %814 = vmatpush.msra.mxu1 %v2898_v59  ;;  %v3178_v59 = vand.u32 4294901760, %v489_v56  ;;  %v3221_v5 = vand.u32 4294901760, %v487_v4  ;;  %v3278_v41 = vand.u32 4294901760, %v475_v16 }
  0x4d   :  { %853 = vmatpush.msra.mxu2 %v3089_v53  ;;  %749 = vmatpush.msra.mxu0 %v556_v8 }
  0x4e   :  { %906 = vmatpush.msra.mxu3 %v905_v54  ;;  %816 = vmatpush.msra.mxu1 %v2905_v62  ;;  %v4589_v62 = vand.u32 4294901760, %v3029_v50  ;;  %v3224_v8 = vsub.f32 %v489_v56, %v3178_v59 }
  0x4f   :  { %855 = vmatpush.msra.mxu2 %v3101_v23  ;;  %753 = vmatpush.msra.mxu0 %v562_v14 }
  0x50   :  { %912 = vmatpush.msra.mxu3 %v911_v24  ;;  %818 = vmatpush.msra.mxu1 %v2910_v0  ;;  %v4590_v0 = vand.u32 4294901760, %v3046_v7  ;;  %v921_v9 = vand.u32 4294901760, %v3224_v8  ;;  %v3268_v7 = vsub.f32 %v479_v38, %v3257_v43  ;;  %v3291_v24 = vsub.f32 %v475_v16, %v3278_v41 }
  0x51   :  { %857 = vmatpush.msra.mxu2 %v3114_v13  ;;  %757 = vmatpush.msra.mxu0 %v568_v11  ;;  %v483_v11 = vld [vmem:[#allocation2 + $0x170] sm:$0xff] }
  0x52   :  { %918 = vmatpush.msra.mxu3 %v917_v25  ;;  %820 = vmatpush.msra.mxu1 %v2919_v2  ;;  %v4592_v2 = vand.u32 4294901760, %v3072_v30  ;;  %v922_v19 = vsub.f32 %v3224_v8, %v921_v9  ;;  %v951_v30 = vand.u32 4294901760, %v3268_v7  ;;  %v471_v25 = vld [vmem:[#allocation2 + $0x110] sm:$0xff] }
  0x53   :  { %859 = vmatpush.msra.mxu2 %v3178_v59  ;;  %761 = vmatpush.msra.mxu0 %v574_v20  ;;  %v3238_v20 = vand.u32 4294901760, %v483_v11 }
  0x54   :  { %822 = vmatpush.msra.mxu1 %v2936_v10  ;;  %v485_v10 = vld [vmem:[#allocation2 + $0x180] sm:$0xff]  ;;  %v952_v31 = vsub.f32 %v3268_v7, %v951_v30 }
  0x55   :  { %765 = vmatpush.msra.mxu0 %v580_v32  ;;  %861 = vmatpush.msra.mxu2 %v3221_v5  ;;  %v3228_v14 = vand.u32 4294901760, %v485_v10  ;;  %v923_v32 = vand.u32 4294901760, %v922_v19 }
  0x56   :  { %824 = vmatpush.msra.mxu1 %v2950_v15  ;;  %v3231_v15 = vsub.f32 %v487_v4, %v3221_v5  ;;  %v953_v56 = vand.u32 4294901760, %v952_v31 }
  0x57   :  { %769 = vmatpush.msra.mxu0 %v586_v37  ;;  %863 = vmatpush.msra.mxu2 %v3228_v14  ;;  %v3241_v27 = vsub.f32 %v485_v10, %v3228_v14  ;;  %v3251_v37 = vsub.f32 %v483_v11, %v3238_v20 }
  0x58   :  { %826 = vmatpush.msra.mxu1 %v2962_v21  ;;  %v927_v21 = vand.u32 4294901760, %v3231_v15  ;;  %924 = vmatpush.msra.mxu3 %v923_v32 }
  0x59   :  { %773 = vmatpush.msra.mxu0 %v592_v42  ;;  %865 = vmatpush.msra.mxu2 %v3238_v20 }
  0x5a   :  { %828 = vmatpush.msra.mxu1 %v2975_v28  ;;  %v481_v28 = vld [vmem:[#allocation2 + $0x160] sm:$0xff]  ;;  %v928_v33 = vsub.f32 %v3231_v15, %v927_v21 }
  0x5b   :  { %777 = vmatpush.msra.mxu0 %v598_v48  ;;  %v939_v48 = vand.u32 4294901760, %v3251_v37 }
  0x5c   :  { %830 = vmatpush.msra.mxu1 %v2988_v35  ;;  %v933_v35 = vand.u32 4294901760, %v3241_v27 }
  0x5d   :  { %781 = vmatpush.msra.mxu0 %v604_v55 }
  0x5e   :  { %832 = vmatpush.msra.mxu1 %v2992_v17  ;;  %v3248_v17 = vand.u32 4294901760, %v481_v28  ;;  %v934_v42 = vsub.f32 %v3241_v27, %v933_v35 }
  0x5f   :  { %785 = vmatpush.msra.mxu0 %v4588_v61 }
  0x60   :  { %834 = vmatpush.msra.mxu1 %v3004_v34  ;;  %v929_v34 = vand.u32 4294901760, %v928_v33  ;;  %867 = vmatpush.msra.mxu2 %v3248_v17  ;;  %v3260_v45 = vsub.f32 %v481_v28, %v3248_v17  ;;  %v935_v50 = vand.u32 4294901760, %v934_v42 }
  0x61   :  { %789 = vmatpush.msra.mxu0 %v4589_v62  ;;  %v3297_v62 = vand.u32 4294901760, %v471_v25 }
  0x62   :  { %836 = vmatpush.msra.mxu1 %v3024_v49  ;;  %v477_v49 = vld [vmem:[#allocation2 + $0x140] sm:$0xff]  ;;  %930 = vmatpush.msra.mxu3 %v929_v34 }
  0x63   :  { %793 = vmatpush.msra.mxu0 %v4590_v0  ;;  %869 = vmatpush.msra.mxu2 %v3257_v43  ;;  %v3265_v55 = vand.u32 4294901760, %v477_v49  ;;  %v3300_v0 = vsub.f32 %v473_v63, %v3288_v3  ;;  %v3308_v11 = vsub.f32 %v471_v25, %v3297_v62 }
  0x64   :  { %838 = vmatpush.msra.mxu1 %v3031_v51  ;;  %v945_v51 = vand.u32 4294901760, %v3260_v45  ;;  %936 = vmatpush.msra.mxu3 %v935_v50 }
  0x65   :  { %797 = vmatpush.msra.mxu0 %v4591_v1  ;;  %871 = vmatpush.msra.mxu2 %v3265_v55  ;;  %v3281_v47 = vsub.f32 %v477_v49, %v3265_v55  ;;  %v963_v1 = vand.u32 4294901760, %v3291_v24  ;;  %v4559_v32 = vand.u32 4294901760, %v3308_v11 }
  0x66   :  { %840 = vmatpush.msra.mxu1 %v3048_v12  ;;  %v940_v12 = vsub.f32 %v3251_v37, %v939_v48 }
  0x67   :  { %801 = vmatpush.msra.mxu0 %v4592_v2  ;;  %873 = vmatpush.msra.mxu2 %v3278_v41  ;;  %v957_v54 = vand.u32 4294901760, %v3281_v47  ;;  %v469_v2 = vld [vmem:[#allocation2 + $0x100] sm:$0xff]  ;;  %v964_v19 = vsub.f32 %v3291_v24, %v963_v1  ;;  %v976_v42 = vsub.f32 %v3308_v11, %v4559_v32 }
  0x68   :  { %842 = vmatpush.msra.mxu1 %v3060_v26  ;;  %v946_v26 = vsub.f32 %v3260_v45, %v945_v51  ;;  %v941_v22 = vand.u32 4294901760, %v940_v12  ;;  %v3305_v10 = vand.u32 4294901760, %v469_v2 }
  0x69   :  { %805 = vmatpush.msra.mxu0 %v4593_v6  ;;  %v958_v61 = vsub.f32 %v3281_v47, %v957_v54  ;;  %875 = vmatpush.msra.mxu2 %v3288_v3  ;;  %v4560_v6 = vand.u32 4294901760, %v3300_v0  ;;  %v965_v38 = vand.u32 4294901760, %v964_v19  ;;  %v977_v50 = vand.u32 4294901760, %v976_v42 }
  0x6a   :  { %v947_v40 = vand.u32 4294901760, %v946_v26  ;;  %942 = vmatpush.msra.mxu3 %v941_v22  ;;  %v3319_v33 = vsub.f32 %v469_v2, %v3305_v10  ;;  %v55_v26 = vld [vmem:[%s4543_s2] sm:$0x3] }
  0x6b   :  { %v959_v4 = vand.u32 4294901760, %v958_v61  ;;  %877 = vmatpush.msra.mxu2 %v3297_v62  ;;  %v970_v28 = vsub.f32 %v3300_v0, %v4560_v6  ;;  %v57_v22 = vperm.slane %v55_v26, 0 }
  0x6c   :  { %948 = vmatpush.msra.mxu3 %v947_v40  ;;  %v4558_v49 = vand.u32 4294901760, %v3319_v33 }
  0x6d   :  { %879 = vmatpush.msra.mxu2 %v3305_v10  ;;  %v971_v34 = vand.u32 4294901760, %v970_v28  ;;  %v58_v28 = vperm.slane %v55_v26, 1 }
  0x6e   :  { %954 = vmatpush.msra.mxu3 %v953_v56  ;;  %v982_v12 = vsub.f32 %v3319_v33, %v4558_v49 }
  0x70   :  { %960 = vmatpush.msra.mxu3 %v959_v4  ;;  %v983_v16 = vand.u32 4294901760, %v982_v12 }
  0x72   :  { %966 = vmatpush.msra.mxu3 %v965_v38 }
  0x74   :  { %972 = vmatpush.msra.mxu3 %v971_v34 }
  0x76   :  { %978 = vmatpush.msra.mxu3 %v977_v50 }
  0x78   :  { %984 = vmatpush.msra.mxu3 %v983_v16 }
  0x91   :  { %v91_v63 = vpop.f32.mrf.mxu0 }
  0x92   :  { %v92_v40 = vadd.f32 %v91_v63, %v57_v22 }
  0x95   :  { %v132_v31 = vpop.f32.mrf.mxu1  ;;  %v189_v61 = vpop.f32.mrf.mxu3 }
  0x96   :  { %v162_v25 = vpop.f32.mrf.mxu2  ;;  %v133_v56 = vadd.f32 %v132_v31, %v92_v40 }
  0x98   :  { %v163_v2 = vadd.f32 %v162_v25, %v133_v56 }
  0x9a   :  { %v190_v4 = vadd.f32 %v189_v61, %v163_v2  ;;  %v4595_v2 = vand.u32 4294901760, %v3099_v60 }
  0x9b   :  { %v222_v19 = vpop.f32.mrf.mxu0 }
  0x9c   :  { %v223_v38 = vadd.f32 %v222_v19, %v190_v4 }
  0x9e   :  { %v247_v34 = vpop.f32.mrf.mxu1  ;;  %v276_v42 = vpop.f32.mrf.mxu2 }
  0x9f   :  { %v248_v50 = vadd.f32 %v247_v34, %v223_v38  ;;  %v277_v12 = vadd.f32 %v276_v42, %v58_v28 }
  0xa1   :  { %v435_v16 = vmax.f32 %v248_v50, 0.0  ;;  %v317_v49 = vpop.f32.mrf.mxu3  ;;  %v452_v50 = vld [vmem:[#allocation2 + $0x78] sm:$0xff] }
  0xa2   :  { %v318_v6 = vadd.f32 %v317_v49, %v277_v12  ;;  %v4594_v49 = vand.u32 4294901760, %v3087_v52 }
  0xa3   :  { %v3331_v32 = vand.u32 4294901760, %v435_v16 }
  0xa4   :  { %v347_v63 = vpop.f32.mrf.mxu0 }
  0xa5   :  { %v3334_v22 = vsub.f32 %v435_v16, %v3331_v32  ;;  %645 = vmatmul.f32.vlgmr.msrb.gmra.mxu1 %v3331_v32  ;;  %v348_v40 = vadd.f32 %v347_v63, %v318_v6 }
  0xa6   :  { %1045 = vmatpush.msrb.mxu1 %v3062_v29  ;;  %v374_v26 = vpop.f32.mrf.mxu1 }
  0xa7   :  { %699 = vmatmul.f32.vlgmr.msrb.gmra.mxu2 %v3334_v22  ;;  %v3340_v31 = vand.u32 4294901760, %v3334_v22  ;;  %v375_v25 = vadd.f32 %v374_v26, %v348_v40  ;;  %v3483_v40 = vand.u32 4294901760, %v452_v50  ;;  %v4599_v26 = vand.u32 4294901760, %v3308_v11 }
  0xa8   :  { %1047 = vmatpush.msrb.mxu1 %v3074_v39  ;;  %1086 = vmatpush.msrb.mxu2 %v4594_v49  ;;  %v407_v56 = vpop.f32.mrf.mxu2 }
  0xa9   :  { %738 = vmatmul.f32.vlgmr.msrb.gmra.mxu3 %v3340_v31  ;;  %v542_v6 = vsub.f32 %v3334_v22, %v3340_v31  ;;  %v408_v61 = vadd.f32 %v407_v56, %v375_v25  ;;  %v448_v56 = vld [vmem:[#allocation2 + $0x58] sm:$0xff] }
  0xaa   :  { %1049 = vmatpush.msrb.mxu1 %v3089_v53  ;;  %1090 = vmatpush.msrb.mxu2 %v4595_v2 }
  0xab   :  { %1153 = vmatpush.msrb.mxu3 %v3062_v29  ;;  %v432_v4 = vpop.f32.mrf.mxu3  ;;  %v3352_v19 = vand.u32 4294901760, %v542_v6 }
  0xac   :  { %v433_v28 = vadd.f32 %v432_v4, %v408_v61  ;;  %1051 = vmatpush.msrb.mxu1 %v3101_v23  ;;  %1094 = vmatpush.msrb.mxu2 %v903_v58  ;;  %v466_v58 = vld [vmem:[#allocation2 + $0xe8] sm:$0xff] }
  0xad   :  { %1155 = vmatpush.msrb.mxu3 %v3074_v39  ;;  %544 = vmatmul.f32.vlgmr.msrb.gmra.mxu0 %v3352_v19 }
  0xae   :  { %v436_v38 = vmax.f32 %v433_v28, 0.0  ;;  %844 = vmatmul.f32.vlgmr.msra.gmra.mxu1 %v3331_v32  ;;  %992 = vmatpush.msrb.mxu0 %v3087_v52  ;;  %v468_v52 = vld [vmem:[#allocation2 + $0xf8] sm:$0xff]  ;;  %v446_v28 = vld [vmem:[#allocation2 + $0x48] sm:$0xff] }
  0xaf   :  { %1053 = vmatpush.msrb.mxu1 %v3114_v13  ;;  %1098 = vmatpush.msrb.mxu2 %v909_v36  ;;  %v464_v36 = vld [vmem:[#allocation2 + $0xd8] sm:$0xff] }
  0xb0   :  { %v3364_v29 = vand.u32 4294901760, %v436_v38  ;;  %1157 = vmatpush.msrb.mxu3 %v3089_v53  ;;  %995 = vmatpush.msrb.mxu0 %v3099_v60  ;;  %v3387_v60 = vand.u32 4294901760, %v468_v52 }
  0xb1   :  { %1055 = vmatpush.msrb.mxu1 %v3178_v59  ;;  %1102 = vmatpush.msrb.mxu2 %v915_v46 }
  0xb2   :  { %v3372_v39 = vsub.f32 %v436_v38, %v3364_v29  ;;  %1159 = vmatpush.msrb.mxu3 %v3101_v23  ;;  %998 = vmatpush.msrb.mxu0 %v3112_v18  ;;  %v462_v18 = vld [vmem:[#allocation2 + $0xc8] sm:$0xff]  ;;  %v3405_v46 = vsub.f32 %v468_v52, %v3387_v60  ;;  %v3510_v38 = vand.u32 4294901760, %v448_v56 }
  0xb3   :  { %1057 = vmatpush.msrb.mxu1 %v3221_v5  ;;  %1106 = vmatpush.msrb.mxu2 %v921_v9 }
  0xb4   :  { %4596 = vst [vmem:[#allocation8_spill] sm:$0xff] %v3372_v39  ;;  %v3380_v53 = vand.u32 4294901760, %v3372_v39  ;;  %1161 = vmatpush.msrb.mxu3 %v3114_v13  ;;  %1001 = vmatpush.msrb.mxu0 %v3124_v57  ;;  %v3395_v57 = vand.u32 4294901760, %v466_v58  ;;  %v4577_v9 = vand.u32 4294901760, %v3405_v46 }
  0xb5   :  { %1059 = vmatpush.msrb.mxu1 %v3228_v14  ;;  %1110 = vmatpush.msrb.mxu2 %v927_v21  ;;  %v458_v21 = vld [vmem:[#allocation2 + $0xa8] sm:$0xff] }
  0xb6   :  { %4597 = vst [vmem:[#allocation9_spill] sm:$0xff] %v3380_v53  ;;  %1163 = vmatpush.msrb.mxu3 %v3178_v59  ;;  %807 = vmatmul.f32.vlgmr.msra.gmra.mxu0 %v3331_v32  ;;  %v883_v23 = vsub.f32 %v3372_v39, %v3380_v53  ;;  %v460_v59 = vld [vmem:[#allocation2 + $0xb8] sm:$0xff] }
  0xb7   :  { %1004 = vmatpush.msrb.mxu0 %v3137_v44  ;;  %1061 = vmatpush.msrb.mxu1 %v3238_v20  ;;  %v3407_v44 = vand.u32 4294901760, %v464_v36 }
  0xb8   :  { %1114 = vmatpush.msrb.mxu2 %v933_v35  ;;  %1165 = vmatpush.msrb.mxu3 %v3221_v5  ;;  %v3400_v13 = vand.u32 4294901760, %v883_v23  ;;  %v3415_v5 = vsub.f32 %v466_v58, %v3395_v57  ;;  %v456_v35 = vld [vmem:[#allocation2 + $0x98] sm:$0xff] }
  0xb9   :  { %1007 = vmatpush.msrb.mxu0 %v3224_v8  ;;  %1063 = vmatpush.msrb.mxu1 %v3248_v17  ;;  %v3417_v8 = vand.u32 4294901760, %v462_v18  ;;  %v444_v23 = vld [vmem:[#allocation2 + $0x38] sm:$0xff] }
  0xba   :  { %1118 = vmatpush.msrb.mxu2 %v939_v48  ;;  %1167 = vmatpush.msrb.mxu3 %v3228_v14  ;;  %v3426_v14 = vsub.f32 %v464_v36, %v3407_v44  ;;  %v3441_v48 = vand.u32 4294901760, %v458_v21 }
  0xbb   :  { %885 = vmatmul.f32.vlgmr.msra.gmra.mxu2 %v3400_v13  ;;  %1010 = vmatpush.msrb.mxu0 %v3231_v15  ;;  %v3428_v15 = vand.u32 4294901760, %v460_v59 }
  0xbc   :  { %1065 = vmatpush.msrb.mxu1 %v3257_v43  ;;  %1122 = vmatpush.msrb.mxu2 %v945_v51  ;;  %v454_v51 = vld [vmem:[#allocation2 + $0x88] sm:$0xff] }
  0xbd   :  { %1169 = vmatpush.msrb.mxu3 %v3238_v20  ;;  %1013 = vmatpush.msrb.mxu0 %v3241_v27  ;;  %v4576_v20 = vand.u32 4294901760, %v3415_v5  ;;  %v3437_v27 = vsub.f32 %v462_v18, %v3417_v8  ;;  %v3451_v34 = vsub.f32 %v460_v59, %v3428_v15  ;;  %v3464_v42 = vand.u32 4294901760, %v454_v51 }
  0xbe   :  { %986 = vmatmul.f32.vlgmr.msra.gmra.mxu3 %v3364_v29  ;;  %1067 = vmatpush.msrb.mxu1 %v3265_v55  ;;  %v3522_v18 = vand.u32 4294901760, %v446_v28 }
  0xbf   :  { %1126 = vmatpush.msrb.mxu2 %v951_v30  ;;  %1171 = vmatpush.msrb.mxu3 %v3248_v17  ;;  %v1233_v17 = vsub.f32 %v3405_v46, %v4577_v9  ;;  %v4574_v30 = vand.u32 4294901760, %v3426_v14  ;;  %v4572_v16 = vand.u32 4294901760, %v3451_v34  ;;  %v3492_v49 = vsub.f32 %v454_v51, %v3464_v42 }
  0xc0   :  { %1016 = vmatpush.msrb.mxu0 %v3251_v37  ;;  %1069 = vmatpush.msrb.mxu1 %v3278_v41  ;;  %v3453_v37 = vand.u32 4294901760, %v456_v35  ;;  %v3534_v51 = vand.u32 4294901760, %v444_v23 }
  0xc1   :  { %1130 = vmatpush.msrb.mxu2 %v957_v54  ;;  %1173 = vmatpush.msrb.mxu3 %v3257_v43  ;;  %v1239_v43 = vsub.f32 %v3415_v5, %v4576_v20  ;;  %v4573_v54 = vand.u32 4294901760, %v3437_v27  ;;  %v1245_v12 = vsub.f32 %v3426_v14, %v4574_v30  ;;  %v1257_v2 = vsub.f32 %v3451_v34, %v4572_v16  ;;  %v486_v16 = vld [vmem:[#allocation2 + $0x188] sm:$0xff] }
  0xc2   :  { %1019 = vmatpush.msrb.mxu0 %v3260_v45  ;;  %1071 = vmatpush.msrb.mxu1 %v3288_v3  ;;  %v3469_v45 = vsub.f32 %v458_v21, %v3441_v48  ;;  %v3479_v63 = vsub.f32 %v456_v35, %v3453_v37  ;;  %v4569_v58 = vand.u32 4294901760, %v3492_v49  ;;  %v3532_v35 = vsub.f32 %v448_v56, %v3510_v38 }
  0xc3   :  { %1134 = vmatpush.msrb.mxu2 %v963_v1  ;;  %1175 = vmatpush.msrb.mxu3 %v3265_v55  ;;  %v4598_v1 = vand.u32 4294901760, %v3300_v0  ;;  %v1234_v55 = vand.u32 4294901760, %v1233_v17  ;;  %v1251_v25 = vsub.f32 %v3437_v27, %v4573_v54  ;;  %v1246_v61 = vand.u32 4294901760, %v1245_v12  ;;  %v480_v54 = vld [vmem:[#allocation2 + $0x158] sm:$0xff] }
  0xc4   :  { %1022 = vmatpush.msrb.mxu0 %v3268_v7  ;;  %1073 = vmatpush.msrb.mxu1 %v3297_v62  ;;  %v450_v7 = vld [vmem:[#allocation2 + $0x68] sm:$0xff]  ;;  %v4570_v4 = vand.u32 4294901760, %v3479_v63  ;;  %v1258_v59 = vand.u32 4294901760, %v1257_v2  ;;  %v1275_v17 = vsub.f32 %v3492_v49, %v4569_v58  ;;  %v3678_v20 = vand.u32 4294901760, %v486_v16 }
  0xc5   :  { %1138 = vmatpush.msrb.mxu2 %v4598_v1  ;;  %1177 = vmatpush.msrb.mxu3 %v3278_v41  ;;  %v1240_v41 = vand.u32 4294901760, %v1239_v43  ;;  %v3497_v6 = vand.u32 4294901760, %v450_v7  ;;  %v1252_v52 = vand.u32 4294901760, %v1251_v25  ;;  %v440_v43 = vld [vmem:[#allocation2 + $0x18] sm:$0xff]  ;;  %v3556_v25 = vsub.f32 %v444_v23, %v3534_v51 }
  0xc6   :  { %1025 = vmatpush.msrb.mxu0 %v3281_v47  ;;  %1075 = vmatpush.msrb.mxu1 %v3305_v10  ;;  %v4571_v47 = vand.u32 4294901760, %v3469_v45  ;;  %v1269_v21 = vsub.f32 %v3479_v63, %v4570_v4  ;;  %v3558_v56 = vand.u32 4294901760, %v440_v43 }
  0xc7   :  { %1142 = vmatpush.msrb.mxu2 %v4599_v26  ;;  %1179 = vmatpush.msrb.mxu3 %v3288_v3  ;;  %v4600_v3 = vand.u32 4294901760, %v3319_v33  ;;  %v3520_v36 = vsub.f32 %v450_v7, %v3497_v6  ;;  %v438_v7 = vld [vmem:[#allocation2 + $0x8] sm:$0xff] }
  0xc8   :  { %1079 = vmatmul.f32.vlgmr.msrb.gmra.mxu1 %v3380_v53  ;;  %1028 = vmatpush.msrb.mxu0 %v3291_v24  ;;  %v3508_v24 = vsub.f32 %v452_v50, %v3483_v40 }
  0xc9   :  { %1235 = vmatpush.msra.mxu1 %v1234_v55  ;;  %1146 = vmatpush.msrb.mxu2 %v4600_v3  ;;  %v4565_v1 = vand.u32 4294901760, %v3520_v36  ;;  %v3544_v55 = vsub.f32 %v446_v28, %v3522_v18  ;;  %v3570_v28 = vand.u32 4294901760, %v438_v7 }
  0xca   :  { %1181 = vmatpush.msrb.mxu3 %v3297_v62  ;;  %1148 = vmatmul.f32.vlgmr.msrb.gmra.mxu2 %v3364_v29  ;;  %v1263_v62 = vsub.f32 %v3469_v45, %v4571_v47  ;;  %v488_v47 = vld [vmem:[#allocation2 + $0x198] sm:$0xff] }
  0xcb   :  { %1241 = vmatpush.msra.mxu1 %v1240_v41  ;;  %1333 = vmatpush.msra.mxu2 %v3405_v46  ;;  %v4563_v41 = vand.u32 4294901760, %v3532_v35  ;;  %v1287_v3 = vsub.f32 %v3520_v36, %v4565_v1  ;;  %v494_v1 = vld [vmem:[#allocation2 + $0x1c8] sm:$0xff]  ;;  %v3665_v30 = vand.u32 4294901760, %v488_v47 }
  0xcc   :  { %1031 = vmatpush.msrb.mxu0 %v3300_v0  ;;  %1183 = vmatpush.msrb.mxu3 %v3305_v10  ;;  %v442_v0 = vld [vmem:[#allocation2 + $0x28] sm:$0xff]  ;;  %v4567_v10 = vand.u32 4294901760, %v3508_v24  ;;  %v1264_v50 = vand.u32 4294901760, %v1263_v62  ;;  %v4562_v62 = vand.u32 4294901760, %v3556_v25 }
  0xcd   :  { %1185 = vmatmul.f32.vlgmr.msrb.gmra.mxu3 %v3364_v29  ;;  %1247 = vmatpush.msra.mxu1 %v1246_v61  ;;  %v3546_v12 = vand.u32 4294901760, %v442_v0  ;;  %v4561_v61 = vand.u32 4294901760, %v3544_v55  ;;  %v1293_v23 = vsub.f32 %v3532_v35, %v4563_v41  ;;  %v496_v41 = vld [vmem:[#allocation2 + $0x1d8] sm:$0xff] }
  0xce   :  { %1336 = vmatpush.msra.mxu2 %v3415_v5  ;;  %1386 = vmatpush.msra.mxu3 %v3387_v60  ;;  %v1281_v26 = vsub.f32 %v3508_v24, %v4567_v10  ;;  %v492_v10 = vld [vmem:[#allocation2 + $0x1b8] sm:$0xff] }
  0xcf   :  { %1034 = vmatpush.msrb.mxu0 %v3308_v11  ;;  %1253 = vmatpush.msra.mxu1 %v1252_v52  ;;  %v1270_v11 = vand.u32 4294901760, %v1269_v21  ;;  %v3568_v2 = vsub.f32 %v442_v0, %v3546_v12  ;;  %v1288_v21 = vand.u32 4294901760, %v1287_v3  ;;  %v1299_v0 = vsub.f32 %v3544_v55, %v4561_v61 }
  0xd0   :  { %1339 = vmatpush.msra.mxu2 %v3426_v14  ;;  %1388 = vmatpush.msra.mxu3 %v3395_v57  ;;  %v1282_v52 = vand.u32 4294901760, %v1281_v26  ;;  %v1305_v26 = vsub.f32 %v3556_v25, %v4562_v62 }
  0xd1   :  { %1037 = vmatpush.msrb.mxu0 %v3319_v33  ;;  %1259 = vmatpush.msra.mxu1 %v1258_v59  ;;  %v1276_v33 = vand.u32 4294901760, %v1275_v17  ;;  %v3580_v59 = vsub.f32 %v440_v43, %v3558_v56  ;;  %v4564_v17 = vand.u32 4294901760, %v3568_v2  ;;  %v500_v43 = vld [vmem:[#allocation2 + $0x1f8] sm:$0xff]  ;;  %v1300_v3 = vand.u32 4294901760, %v1299_v0 }
  0xd2   :  { %1040 = vmatmul.f32.vlgmr.msrb.gmra.mxu0 %v3372_v39  ;;  %1342 = vmatpush.msra.mxu2 %v3437_v27  ;;  %v3606_v61 = vand.u32 4294901760, %v500_v43  ;;  %v1306_v62 = vand.u32 4294901760, %v1305_v26 }
  0xd3   :  { %1190 = vmatpush.msra.mxu0 %v3387_v60  ;;  %1390 = vmatpush.msra.mxu3 %v3407_v44 }
  0xd4   :  { %1265 = vmatpush.msra.mxu1 %v1264_v50  ;;  %1345 = vmatpush.msra.mxu2 %v3451_v34  ;;  %v3590_v50 = vsub.f32 %v438_v7, %v3570_v28  ;;  %v498_v7 = vld [vmem:[#allocation2 + $0x1e8] sm:$0xff]  ;;  %v3623_v26 = vsub.f32 %v500_v43, %v3606_v61  ;;  %v3635_v43 = vand.u32 4294901760, %v494_v1 }
  0xd5   :  { %1192 = vmatpush.msra.mxu0 %v3395_v57  ;;  %1392 = vmatpush.msra.mxu3 %v3417_v8  ;;  %v3614_v0 = vand.u32 4294901760, %v498_v7 }
  0xd6   :  { %1271 = vmatpush.msra.mxu1 %v1270_v11  ;;  %1348 = vmatpush.msra.mxu2 %v3469_v45  ;;  %4601 = vst [vmem:[#allocation10_spill] sm:$0xff] %v3590_v50  ;;  %v1294_v11 = vand.u32 4294901760, %v1293_v23  ;;  %v4568_v23 = vand.u32 4294901760, %v3590_v50  ;;  %v4575_v4 = vand.u32 4294901760, %v3623_v26 }
  0xd7   :  { %1194 = vmatpush.msra.mxu0 %v3407_v44  ;;  %1394 = vmatpush.msra.mxu3 %v3428_v15 }
  0xd8   :  { %1277 = vmatpush.msra.mxu1 %v1276_v33  ;;  %1351 = vmatpush.msra.mxu2 %v3479_v63  ;;  %v4566_v33 = vand.u32 4294901760, %v3580_v59 }
  0xd9   :  { %1196 = vmatpush.msra.mxu0 %v3417_v8  ;;  %1396 = vmatpush.msra.mxu3 %v3441_v48 }
  0xda   :  { %1283 = vmatpush.msra.mxu1 %v1282_v52  ;;  %1354 = vmatpush.msra.mxu2 %v3492_v49  ;;  %v1311_v52 = vsub.f32 %v3568_v2, %v4564_v17 }
  0xdb   :  { %1198 = vmatpush.msra.mxu0 %v3428_v15  ;;  %1398 = vmatpush.msra.mxu3 %v3453_v37 }
  0xdc   :  { %1289 = vmatpush.msra.mxu1 %v1288_v21  ;;  %1357 = vmatpush.msra.mxu2 %v3508_v24  ;;  %v1317_v21 = vsub.f32 %v3580_v59, %v4566_v33  ;;  %v1312_v17 = vand.u32 4294901760, %v1311_v52  ;;  %v3627_v33 = vand.u32 4294901760, %v496_v41  ;;  %v3631_v52 = vsub.f32 %v498_v7, %v3614_v0 }
  0xdd   :  { %1200 = vmatpush.msra.mxu0 %v3441_v48  ;;  %1400 = vmatpush.msra.mxu3 %v3464_v42 }
  0xde   :  { %1295 = vmatpush.msra.mxu1 %v1294_v11  ;;  %1360 = vmatpush.msra.mxu2 %v3520_v36  ;;  %v1323_v11 = vsub.f32 %v3590_v50, %v4568_v23  ;;  %v490_v23 = vld [vmem:[#allocation2 + $0x1a8] sm:$0xff]  ;;  %v3644_v7 = vsub.f32 %v496_v41, %v3627_v33  ;;  %v1574_v41 = vsub.f32 %v3623_v26, %v4575_v4 }
  0xdf   :  { %1202 = vmatpush.msra.mxu0 %v3453_v37  ;;  %1402 = vmatpush.msra.mxu3 %v3483_v40  ;;  %v3689_v4 = vsub.f32 %v488_v47, %v3665_v30  ;;  %v3702_v47 = vsub.f32 %v486_v16, %v3678_v20 }
  0xe0   :  { %1301 = vmatpush.msra.mxu1 %v1300_v3  ;;  %1363 = vmatpush.msra.mxu2 %v3532_v35  ;;  %v1318_v3 = vand.u32 4294901760, %v1317_v21  ;;  %v1324_v58 = vand.u32 4294901760, %v1323_v11  ;;  %v4578_v21 = vand.u32 4294901760, %v3631_v52  ;;  %v3653_v11 = vsub.f32 %v494_v1, %v3635_v43  ;;  %v484_v1 = vld [vmem:[#allocation2 + $0x178] sm:$0xff] }
  0xe1   :  { %1204 = vmatpush.msra.mxu0 %v3464_v42  ;;  %1404 = vmatpush.msra.mxu3 %v3497_v6  ;;  %v1575_v9 = vand.u32 4294901760, %v1574_v41  ;;  %v3691_v39 = vand.u32 4294901760, %v484_v1 }
  0xe2   :  { %1307 = vmatpush.msra.mxu1 %v1306_v62  ;;  %1366 = vmatpush.msra.mxu2 %v3544_v55  ;;  %v3639_v62 = vand.u32 4294901760, %v492_v10  ;;  %4602 = vst [vmem:[#allocation11_spill] sm:$0xff] %v3653_v11 }
  0xe3   :  { %1206 = vmatpush.msra.mxu0 %v3483_v40  ;;  %1406 = vmatpush.msra.mxu3 %v3510_v38  ;;  %v3714_v16 = vsub.f32 %v484_v1, %v3691_v39 }
  0xe4   :  { %1313 = vmatpush.msra.mxu1 %v1312_v17  ;;  %1369 = vmatpush.msra.mxu2 %v3556_v25  ;;  %v3648_v17 = vand.u32 4294901760, %v490_v23 }
  0xe5   :  { %1208 = vmatpush.msra.mxu0 %v3497_v6  ;;  %1408 = vmatpush.msra.mxu3 %v3522_v18 }
  0xe6   :  { %1319 = vmatpush.msra.mxu1 %v1318_v3  ;;  %1372 = vmatpush.msra.mxu2 %v3568_v2  ;;  %v3660_v3 = vsub.f32 %v492_v10, %v3639_v62  ;;  %v3673_v10 = vsub.f32 %v490_v23, %v3648_v17 }
  0xe7   :  { %1210 = vmatpush.msra.mxu0 %v3510_v38  ;;  %1410 = vmatpush.msra.mxu3 %v3534_v51 }
  0xe8   :  { %1325 = vmatpush.msra.mxu1 %v1324_v58  ;;  %1375 = vmatpush.msra.mxu2 %v3580_v59  ;;  %4603 = vst [vmem:[#allocation12_spill] sm:$0xff] %v3660_v3  ;;  %v1580_v58 = vsub.f32 %v3631_v52, %v4578_v21  ;;  %v482_v21 = vld [vmem:[#allocation2 + $0x168] sm:$0xff] }
  0xe9   :  { %1212 = vmatpush.msra.mxu0 %v3522_v18  ;;  %1412 = vmatpush.msra.mxu3 %v3546_v12  ;;  %4604 = vst [vmem:[#allocation13_spill] sm:$0xff] %v3673_v10  ;;  %v3704_v53 = vand.u32 4294901760, %v482_v21 }
  0xea   :  { %1327 = vmatmul.f32.vlgmr.msra.gmra.mxu1 %v3331_v32  ;;  %1378 = vmatpush.msra.mxu2 %v3590_v50  ;;  %v478_v50 = vld [vmem:[#allocation2 + $0x148] sm:$0xff] }
  0xeb   :  { %1494 = vmatpush.msrb.mxu1 %v3387_v60  ;;  %1214 = vmatpush.msra.mxu0 %v3534_v51  ;;  %v4605_v60 = vand.u32 4294901760, %v3644_v7  ;;  %v3726_v1 = vsub.f32 %v482_v21, %v3704_v53 }
  0xec   :  { %1414 = vmatpush.msra.mxu3 %v3558_v56  ;;  %1381 = vmatmul.f32.vlgmr.msra.gmra.mxu2 %v3334_v22  ;;  %v1581_v22 = vand.u32 4294901760, %v1580_v58  ;;  %v4607_v58 = vand.u32 4294901760, %v3660_v3 }
  0xed   :  { %1496 = vmatpush.msrb.mxu1 %v3395_v57  ;;  %1531 = vmatpush.msrb.mxu2 %v3606_v61  ;;  %v1586_v23 = vsub.f32 %v3644_v7, %v4605_v60  ;;  %v4606_v57 = vand.u32 4294901760, %v3653_v11 }
  0xee   :  { %1216 = vmatpush.msra.mxu0 %v3546_v12  ;;  %1416 = vmatpush.msra.mxu3 %v3570_v28  ;;  %v1598_v41 = vsub.f32 %v3660_v3, %v4607_v58  ;;  %v476_v3 = vld [vmem:[#allocation2 + $0x138] sm:$0xff] }
  0xef   :  { %1420 = vmatmul.f32.vlgmr.msra.gmra.mxu3 %v3340_v31  ;;  %1498 = vmatpush.msrb.mxu1 %v3407_v44  ;;  %v1592_v60 = vsub.f32 %v3653_v11, %v4606_v57  ;;  %v1587_v31 = vand.u32 4294901760, %v1586_v23  ;;  %v3716_v57 = vand.u32 4294901760, %v480_v54  ;;  %v3728_v44 = vand.u32 4294901760, %v478_v50  ;;  %v474_v11 = vld [vmem:[#allocation2 + $0x128] sm:$0xff]  ;;  %v472_v23 = vld [vmem:[#allocation2 + $0x118] sm:$0xff] }
  0xf0   :  { %1533 = vmatpush.msrb.mxu2 %v3614_v0  ;;  %1576 = vmatpush.msrb.mxu3 %v1575_v9  ;;  %v4608_v9 = vand.u32 4294901760, %v3673_v10 }
  0xf1   :  { %1218 = vmatpush.msra.mxu0 %v3558_v56  ;;  %1500 = vmatpush.msrb.mxu1 %v3417_v8  ;;  %v1593_v8 = vand.u32 4294901760, %v1592_v60  ;;  %v3739_v21 = vsub.f32 %v480_v54, %v3716_v57  ;;  %v3752_v54 = vsub.f32 %v478_v50, %v3728_v44 }
  0xf2   :  { %1535 = vmatpush.msrb.mxu2 %v3627_v33  ;;  %1582 = vmatpush.msrb.mxu3 %v1581_v22  ;;  %v1604_v58 = vsub.f32 %v3673_v10, %v4608_v9  ;;  %v1599_v22 = vand.u32 4294901760, %v1598_v41  ;;  %v4609_v9 = vand.u32 4294901760, %v3405_v46  ;;  %v3741_v10 = vand.u32 4294901760, %v476_v3 }
  0xf3   :  { %1220 = vmatpush.msra.mxu0 %v3570_v28  ;;  %1502 = vmatpush.msrb.mxu1 %v3428_v15  ;;  %v4610_v15 = vand.u32 4294901760, %v3689_v4  ;;  %v4611_v46 = vand.u32 4294901760, %v3415_v5  ;;  %v4612_v41 = vand.u32 4294901760, %v3702_v47  ;;  %v4613_v5 = vand.u32 4294901760, %v3426_v14 }
  0xf4   :  { %1226 = vmatmul.f32.vlgmr.msra.gmra.mxu0 %v3352_v19  ;;  %1537 = vmatpush.msrb.mxu2 %v3635_v43  ;;  %v1605_v19 = vand.u32 4294901760, %v1604_v58  ;;  %v4614_v58 = vand.u32 4294901760, %v3714_v16  ;;  %v3765_v50 = vsub.f32 %v476_v3, %v3741_v10  ;;  %v4615_v14 = vand.u32 4294901760, %v3437_v27 }
  0xf5   :  { %1427 = vmatpush.msrb.mxu0 %v4609_v9  ;;  %1588 = vmatpush.msrb.mxu3 %v1587_v31  ;;  %v1610_v60 = vsub.f32 %v3689_v4, %v4610_v15  ;;  %v1616_v31 = vsub.f32 %v3702_v47, %v4612_v41  ;;  %v1627_v9 = vand.u32 4294901760, %v3726_v1  ;;  %v3754_v15 = vand.u32 4294901760, %v474_v11  ;;  %v470_v41 = vld [vmem:[#allocation2 + $0x108] sm:$0xff] }
  0xf6   :  { %1504 = vmatpush.msrb.mxu1 %v3441_v48  ;;  %1539 = vmatpush.msrb.mxu2 %v3639_v62  ;;  %v4616_v27 = vand.u32 4294901760, %v3451_v34 }
  0xf7   :  { %1431 = vmatpush.msrb.mxu0 %v4611_v46  ;;  %1594 = vmatpush.msrb.mxu3 %v1593_v8  ;;  %v1611_v48 = vand.u32 4294901760, %v1610_v60  ;;  %v1622_v8 = vsub.f32 %v3714_v16, %v4614_v58  ;;  %v1633_v46 = vand.u32 4294901760, %v3739_v21  ;;  %v1628_v60 = vsub.f32 %v3726_v1, %v1627_v9 }
  0xf8   :  { %1506 = vmatpush.msrb.mxu1 %v3453_v37  ;;  %1541 = vmatpush.msrb.mxu2 %v3648_v17  ;;  %v3769_v37 = vand.u32 4294901760, %v472_v23  ;;  %v3778_v3 = vsub.f32 %v474_v11, %v3754_v15  ;;  %v1645_v58 = vand.u32 4294901760, %v3765_v50  ;;  %v4617_v11 = vand.u32 4294901760, %v3469_v45 }
  0xf9   :  { %1435 = vmatpush.msrb.mxu0 %v4613_v5  ;;  %1600 = vmatpush.msrb.mxu3 %v1599_v22  ;;  %v1617_v22 = vand.u32 4294901760, %v1616_v31  ;;  %v1639_v5 = vand.u32 4294901760, %v3752_v54  ;;  %v1634_v31 = vsub.f32 %v3739_v21, %v1633_v46  ;;  %v1629_v34 = vand.u32 4294901760, %v1628_v60 }
  0xfa   :  { %1508 = vmatpush.msrb.mxu1 %v3464_v42  ;;  %1543 = vmatpush.msrb.mxu2 %v3665_v30  ;;  %v3782_v42 = vand.u32 4294901760, %v470_v41 }
  0xfb   :  { %1439 = vmatpush.msrb.mxu0 %v4615_v14  ;;  %1606 = vmatpush.msrb.mxu3 %v1605_v19  ;;  %v1623_v19 = vand.u32 4294901760, %v1622_v8  ;;  %v1651_v8 = vand.u32 4294901760, %v3778_v3  ;;  %v1635_v45 = vand.u32 4294901760, %v1634_v31  ;;  %v1646_v14 = vsub.f32 %v3765_v50, %v1645_v58 }
  0xfc   :  { %1510 = vmatpush.msrb.mxu1 %v3483_v40  ;;  %1545 = vmatpush.msrb.mxu2 %v3678_v20  ;;  %v3793_v40 = vsub.f32 %v472_v23, %v3769_v37  ;;  %v4618_v23 = vand.u32 4294901760, %v3479_v63  ;;  %v4623_v31 = vand.u32 4294901760, %v3544_v55  ;;  %v4626_v55 = vand.u32 4294901760, %v3568_v2  ;;  %v4630_v2 = vld [vmem:[#allocation10_spill] sm:$0xff] }
  0xfd   :  { %1443 = vmatpush.msrb.mxu0 %v4616_v27  ;;  %1612 = vmatpush.msrb.mxu3 %v1611_v48  ;;  %v1640_v48 = vsub.f32 %v3752_v54, %v1639_v5  ;;  %v1652_v63 = vsub.f32 %v3778_v3, %v1651_v8  ;;  %v1647_v27 = vand.u32 4294901760, %v1646_v14 }
  0xfe   :  { %1512 = vmatpush.msrb.mxu1 %v3497_v6  ;;  %1547 = vmatpush.msrb.mxu2 %v3691_v39  ;;  %v3804_v6 = vsub.f32 %v470_v41, %v3782_v42 }
  0xff   :  { %1447 = vmatpush.msrb.mxu0 %v4617_v11  ;;  %1618 = vmatpush.msrb.mxu3 %v1617_v22  ;;  %v4619_v22 = vand.u32 4294901760, %v3492_v49  ;;  %v1641_v41 = vand.u32 4294901760, %v1640_v48  ;;  %v4627_v11 = vand.u32 4294901760, %v3631_v52  ;;  %v4632_v48 = vld [vmem:[#allocation11_spill] sm:$0xff] }
 0x100   :  { %1514 = vmatpush.msrb.mxu1 %v3510_v38  ;;  %1549 = vmatpush.msrb.mxu2 %v3704_v53  ;;  %v1657_v38 = vand.u32 4294901760, %v3793_v40  ;;  %v1663_v60 = vand.u32 4294901760, %v3804_v6 }
 0x101   :  { %1451 = vmatpush.msrb.mxu0 %v4618_v23  ;;  %1624 = vmatpush.msrb.mxu3 %v1623_v19  ;;  %v4621_v19 = vand.u32 4294901760, %v3520_v36  ;;  %v4633_v23 = vand.u32 4294901760, %v4632_v48 }
 0x102   :  { %1516 = vmatpush.msrb.mxu1 %v3522_v18  ;;  %1551 = vmatpush.msrb.mxu2 %v3716_v57  ;;  %v4620_v18 = vand.u32 4294901760, %v3508_v24  ;;  %v1658_v49 = vsub.f32 %v3793_v40, %v1657_v38  ;;  %v1664_v24 = vsub.f32 %v3804_v6, %v1663_v60 }
 0x103   :  { %1455 = vmatpush.msrb.mxu0 %v4619_v22  ;;  %1630 = vmatpush.msrb.mxu3 %v1629_v34  ;;  %v4631_v34 = vand.u32 4294901760, %v4630_v2 }
 0x104   :  { %1518 = vmatpush.msrb.mxu1 %v3534_v51  ;;  %1553 = vmatpush.msrb.mxu2 %v3728_v44  ;;  %v1653_v51 = vand.u32 4294901760, %v1652_v63  ;;  %v1659_v36 = vand.u32 4294901760, %v1658_v49  ;;  %v1884_v63 = vld [vmem:[%s4546_s5 + $0x58] sm:$0xff] }
 0x105   :  { %1459 = vmatpush.msrb.mxu0 %v4620_v18  ;;  %1636 = vmatpush.msrb.mxu3 %v1635_v45 }
 0x106   :  { %1520 = vmatpush.msrb.mxu1 %v3546_v12  ;;  %1555 = vmatpush.msrb.mxu2 %v3741_v10  ;;  %v4622_v12 = vand.u32 4294901760, %v3532_v35  ;;  %v4624_v35 = vand.u32 4294901760, %v3556_v25  ;;  %v4629_v25 = vand.u32 4294901760, %v3644_v7 }
 0x107   :  { %1463 = vmatpush.msrb.mxu0 %v4621_v19  ;;  %1642 = vmatpush.msrb.mxu3 %v1641_v41  ;;  %v3938_v19 = vand.u32 4294901760, %v1884_v63 }
 0x108   :  { %1522 = vmatpush.msrb.mxu1 %v3558_v56  ;;  %1557 = vmatpush.msrb.mxu2 %v3754_v15  ;;  %v1665_v56 = vand.u32 4294901760, %v1664_v24  ;;  %v1881_v24 = vld [vmem:[%s4546_s5 + $0x40] sm:$0xff] }
 0x109   :  { %1467 = vmatpush.msrb.mxu0 %v4622_v12  ;;  %1648 = vmatpush.msrb.mxu3 %v1647_v27  ;;  %v1883_v27 = vld [vmem:[%s4546_s5 + $0x50] sm:$0xff]  ;;  %v3969_v12 = vsub.f32 %v1884_v63, %v3938_v19 }
 0x10a   :  { %1524 = vmatpush.msrb.mxu1 %v3570_v28  ;;  %1559 = vmatpush.msrb.mxu2 %v3769_v37  ;;  %v4625_v28 = vand.u32 4294901760, %v3623_v26 }
 0x10b   :  { %1471 = vmatpush.msrb.mxu0 %v4623_v31  ;;  %1654 = vmatpush.msrb.mxu3 %v1653_v51  ;;  %v1882_v51 = vld [vmem:[%s4546_s5 + $0x48] sm:$0xff] }
 0x10c   :  { %1526 = vmatmul.f32.vlgmr.msrb.gmra.mxu1 %v3331_v32  ;;  %1561 = vmatpush.msrb.mxu2 %v3782_v42 }
 0x10d   :  { %1727 = vmatpush.msra.mxu1 %v3606_v61  ;;  %1475 = vmatpush.msrb.mxu0 %v4624_v35  ;;  %v1976_v35 = vand.u32 4294901760, %v3969_v12 }
 0x10e   :  { %1660 = vmatpush.msrb.mxu3 %v1659_v36  ;;  %1567 = vmatmul.f32.vlgmr.msrb.gmra.mxu2 %v3400_v13  ;;  %v4628_v13 = vand.u32 4294901760, %v3580_v59 }
 0x10f   :  { %1729 = vmatpush.msra.mxu1 %v3614_v0  ;;  %1768 = vmatpush.msra.mxu2 %v4625_v28 }
 0x110   :  { %1479 = vmatpush.msrb.mxu0 %v4626_v55  ;;  %1666 = vmatpush.msrb.mxu3 %v1665_v56 }
 0x111   :  { %1668 = vmatmul.f32.vlgmr.msrb.gmra.mxu3 %v3364_v29  ;;  %1731 = vmatpush.msra.mxu1 %v3627_v33 }
 0x112   :  { %1772 = vmatpush.msra.mxu2 %v4627_v11  ;;  %1835 = vmatpush.msra.mxu3 %v3606_v61  ;;  %v4634_v61 = vld [vmem:[#allocation12_spill] sm:$0xff] }
 0x113   :  { %1483 = vmatpush.msrb.mxu0 %v4628_v13  ;;  %1733 = vmatpush.msra.mxu1 %v3635_v43  ;;  %v4635_v59 = vand.u32 4294901760, %v4634_v61 }
 0x114   :  { %1776 = vmatpush.msra.mxu2 %v4629_v25  ;;  %1837 = vmatpush.msra.mxu3 %v3614_v0  ;;  %v1888_v0 = vld [vmem:[%s4546_s5 + $0x78] sm:$0xff]  ;;  %v4641_v25 = vld [vmem:[#allocation9_spill] sm:$0xff] }
 0x115   :  { %1487 = vmatpush.msrb.mxu0 %v4631_v34  ;;  %1735 = vmatpush.msra.mxu1 %v3639_v62  ;;  %v1977_v34 = vsub.f32 %v3969_v12, %v1976_v35 }
 0x116   :  { %1489 = vmatmul.f32.vlgmr.msrb.gmra.mxu0 %v3331_v32  ;;  %1780 = vmatpush.msra.mxu2 %v4633_v23  ;;  %v4636_v32 = vld [vmem:[#allocation13_spill] sm:$0xff] }
 0x117   :  { %1674 = vmatpush.msra.mxu0 %v3623_v26  ;;  %1839 = vmatpush.msra.mxu3 %v3627_v33  ;;  %v4637_v45 = vand.u32 4294901760, %v4636_v32  ;;  %v1887_v33 = vld [vmem:[%s4546_s5 + $0x70] sm:$0xff]  ;;  %v3888_v26 = vand.u32 4294901760, %v1888_v0 }
 0x118   :  { %1737 = vmatpush.msra.mxu1 %v3648_v17  ;;  %1784 = vmatpush.msra.mxu2 %v4635_v59  ;;  %v3898_v14 = vand.u32 4294901760, %v1887_v33 }
 0x119   :  { %1677 = vmatpush.msra.mxu0 %v3631_v52  ;;  %1841 = vmatpush.msra.mxu3 %v3635_v43  ;;  %v4638_v52 = vand.u32 4294901760, %v3689_v4  ;;  %v1886_v43 = vld [vmem:[%s4546_s5 + $0x68] sm:$0xff]  ;;  %v3909_v22 = vsub.f32 %v1888_v0, %v3888_v26 }
 0x11a   :  { %1739 = vmatpush.msra.mxu1 %v3665_v30  ;;  %1788 = vmatpush.msra.mxu2 %v4637_v45  ;;  %v3911_v41 = vand.u32 4294901760, %v1886_v43 }
 0x11b   :  { %1680 = vmatpush.msra.mxu0 %v3644_v7  ;;  %1843 = vmatpush.msra.mxu3 %v3639_v62  ;;  %v4639_v62 = vand.u32 4294901760, %v3702_v47  ;;  %v1885_v7 = vld [vmem:[%s4546_s5 + $0x60] sm:$0xff] }
 0x11c   :  { %1741 = vmatpush.msra.mxu1 %v3678_v20  ;;  %1792 = vmatpush.msra.mxu2 %v4638_v52  ;;  %v3924_v18 = vand.u32 4294901760, %v1885_v7  ;;  %v3936_v49 = vsub.f32 %v1886_v43, %v3911_v41  ;;  %v1978_v52 = vand.u32 4294901760, %v1977_v34 }
 0x11d   :  { %1683 = vmatpush.msra.mxu0 %v4632_v48  ;;  %1845 = vmatpush.msra.mxu3 %v3648_v17  ;;  %v4640_v17 = vand.u32 4294901760, %v3714_v16 }
 0x11e   :  { %1743 = vmatpush.msra.mxu1 %v3691_v39  ;;  %1796 = vmatpush.msra.mxu2 %v4639_v62 }
 0x11f   :  { %1686 = vmatpush.msra.mxu0 %v4634_v61  ;;  %1847 = vmatpush.msra.mxu3 %v3665_v30  ;;  %v3922_v30 = vsub.f32 %v1887_v33, %v3898_v14 }
 0x120   :  { %1745 = vmatpush.msra.mxu1 %v3704_v53  ;;  %1800 = vmatpush.msra.mxu2 %v4640_v17 }
 0x121   :  { %1689 = vmatpush.msra.mxu0 %v4636_v32  ;;  %1849 = vmatpush.msra.mxu3 %v3678_v20  ;;  %v1952_v20 = vand.u32 4294901760, %v3909_v22 }
 0x122   :  { %1747 = vmatpush.msra.mxu1 %v3716_v57  ;;  %1804 = vmatpush.msra.mxu2 %v1627_v9  ;;  %v3952_v9 = vand.u32 4294901760, %v1883_v27 }
 0x123   :  { %1692 = vmatpush.msra.mxu0 %v3689_v4  ;;  %1851 = vmatpush.msra.mxu3 %v3691_v39  ;;  %v1958_v39 = vand.u32 4294901760, %v3922_v30  ;;  %v3950_v4 = vsub.f32 %v1885_v7, %v3924_v18 }
 0x124   :  { %1749 = vmatpush.msra.mxu1 %v3728_v44  ;;  %1808 = vmatpush.msra.mxu2 %v1633_v46  ;;  %v3960_v46 = vand.u32 4294901760, %v1882_v51  ;;  %v3986_v31 = vsub.f32 %v1883_v27, %v3952_v9 }
 0x125   :  { %1695 = vmatpush.msra.mxu0 %v3702_v47  ;;  %1853 = vmatpush.msra.mxu3 %v3704_v53  ;;  %v1953_v53 = vsub.f32 %v3909_v22, %v1952_v20  ;;  %v1964_v47 = vand.u32 4294901760, %v3936_v49  ;;  %v1970_v36 = vand.u32 4294901760, %v3950_v4 }
 0x126   :  { %1751 = vmatpush.msra.mxu1 %v3741_v10  ;;  %1812 = vmatpush.msra.mxu2 %v1639_v5  ;;  %v3974_v5 = vand.u32 4294901760, %v1881_v24  ;;  %v1982_v11 = vand.u32 4294901760, %v3986_v31 }
 0x127   :  { %1698 = vmatpush.msra.mxu0 %v3714_v16  ;;  %1855 = vmatpush.msra.mxu3 %v3716_v57  ;;  %v1880_v16 = vld [vmem:[%s4546_s5 + $0x38] sm:$0xff]  ;;  %v1959_v57 = vsub.f32 %v3922_v30, %v1958_v39  ;;  %v1965_v56 = vsub.f32 %v3936_v49, %v1964_v47  ;;  %v1971_v55 = vsub.f32 %v3950_v4, %v1970_v36 }
 0x128   :  { %1753 = vmatpush.msra.mxu1 %v3754_v15  ;;  %1816 = vmatpush.msra.mxu2 %v1645_v58  ;;  %v3992_v58 = vsub.f32 %v1882_v51, %v3960_v46  ;;  %v4003_v28 = vand.u32 4294901760, %v1880_v16  ;;  %v1983_v32 = vsub.f32 %v3986_v31, %v1982_v11 }
 0x129   :  { %1701 = vmatpush.msra.mxu0 %v3726_v1  ;;  %1857 = vmatpush.msra.mxu3 %v3728_v44  ;;  %v1879_v44 = vld [vmem:[%s4546_s5 + $0x30] sm:$0xff]  ;;  %v1954_v1 = vand.u32 4294901760, %v1953_v53  ;;  %v1966_v2 = vand.u32 4294901760, %v1965_v56  ;;  %v1972_v59 = vand.u32 4294901760, %v1971_v55  ;;  %v1873_v53 = vld [vmem:[%s4546_s5] sm:$0xff] }
 0x12a   :  { %1755 = vmatpush.msra.mxu1 %v3769_v37  ;;  %1820 = vmatpush.msra.mxu2 %v1651_v8  ;;  %v4009_v8 = vsub.f32 %v1881_v24, %v3974_v5  ;;  %v4025_v13 = vand.u32 4294901760, %v1879_v44  ;;  %v4039_v48 = vsub.f32 %v1880_v16, %v4003_v28  ;;  %v545_v0 = vpop.f32.mrf.mxu0  ;;  %v1984_v63 = vand.u32 4294901760, %v1983_v32  ;;  %v646_v16 = vpop.f32.mrf.mxu1 }
 0x12b   :  { %1704 = vmatpush.msra.mxu0 %v3739_v21  ;;  %1859 = vmatpush.msra.mxu3 %v3741_v10  ;;  %v1878_v10 = vld [vmem:[%s4546_s5 + $0x28] sm:$0xff]  ;;  %v1960_v21 = vand.u32 4294901760, %v1959_v57  ;;  %v700_v34 = vpop.f32.mrf.mxu2 }
 0x12c   :  { %1757 = vmatpush.msra.mxu1 %v3782_v42  ;;  %1824 = vmatpush.msra.mxu2 %v1657_v38  ;;  %v4022_v38 = vld [vmem:[%s4545_s4] sm:$0x3]  ;;  %v4041_v23 = vand.u32 4294901760, %v1878_v10  ;;  %v1994_v61 = vand.u32 4294901760, %v4009_v8  ;;  %v2000_v43 = vand.u32 4294901760, %v4039_v48  ;;  %v4642_v57 = vld [vmem:[#allocation8_spill] sm:$0xff] }
 0x12d   :  { %1707 = vmatpush.msra.mxu0 %v3752_v54  ;;  %1861 = vmatpush.msra.mxu3 %v3754_v15  ;;  %v1988_v54 = vand.u32 4294901760, %v3992_v58  ;;  %v1877_v15 = vld [vmem:[%s4546_s5 + $0x20] sm:$0xff] }
 0x12e   :  { %1761 = vmatmul.f32.vlgmr.msra.gmra.mxu1 %v4641_v25  ;;  %1828 = vmatpush.msra.mxu2 %v1663_v60  ;;  %v503_v60 = vperm.slane %v4022_v38, 0  ;;  %v4057_v45 = vand.u32 4294901760, %v1877_v15  ;;  %v4070_v62 = vsub.f32 %v1878_v10, %v4041_v23  ;;  %v1995_v17 = vsub.f32 %v4009_v8, %v1994_v61 }
 0x12f   :  { %1955 = vmatpush.msrb.mxu1 %v1954_v1  ;;  %1710 = vmatpush.msra.mxu0 %v3765_v50  ;;  %v1876_v50 = vld [vmem:[%s4546_s5 + $0x18] sm:$0xff]  ;;  %v1989_v33 = vsub.f32 %v3992_v58, %v1988_v54 }
 0x130   :  { %1863 = vmatpush.msra.mxu3 %v3769_v37  ;;  %1830 = vmatmul.f32.vlgmr.msra.gmra.mxu2 %v3364_v29  ;;  %v4055_v37 = vsub.f32 %v1879_v44, %v4025_v13  ;;  %v546_v7 = vadd.f32 %v545_v0, %v503_v60  ;;  %v4084_v51 = vsub.f32 %v1877_v15, %v4057_v45  ;;  %v2012_v1 = vand.u32 4294901760, %v4070_v62 }
 0x131   :  { %1961 = vmatpush.msrb.mxu1 %v1960_v21  ;;  %1713 = vmatpush.msra.mxu0 %v3778_v3  ;;  %v1875_v3 = vld [vmem:[%s4546_s5 + $0x10] sm:$0xff]  ;;  %v2001_v44 = vsub.f32 %v4039_v48, %v2000_v43  ;;  %v1996_v21 = vand.u32 4294901760, %v1995_v17  ;;  %v739_v17 = vpop.f32.mrf.mxu3 }
 0x132   :  { %1865 = vmatpush.msra.mxu3 %v3782_v42  ;;  %2053 = vmatpush.msrb.mxu2 %v3909_v22  ;;  %v4072_v42 = vand.u32 4294901760, %v1876_v50  ;;  %v2006_v27 = vand.u32 4294901760, %v4055_v37  ;;  %v4086_v24 = vand.u32 4294901760, %v1875_v3  ;;  %v647_v10 = vadd.f32 %v646_v16, %v546_v7 }
 0x133   :  { %1867 = vmatmul.f32.vlgmr.msra.gmra.mxu3 %v3364_v29  ;;  %1967 = vmatpush.msrb.mxu1 %v1966_v2  ;;  %v1874_v29 = vld [vmem:[%s4546_s5 + $0x8] sm:$0xff]  ;;  %v2018_v25 = vand.u32 4294901760, %v4084_v51  ;;  %v4113_v2 = vand.u32 4294901760, %v1873_v53  ;;  %v2002_v60 = vand.u32 4294901760, %v2001_v44 }
 0x134   :  { %1716 = vmatpush.msra.mxu0 %v3793_v40  ;;  %2056 = vmatpush.msrb.mxu2 %v3922_v30  ;;  %v1990_v40 = vand.u32 4294901760, %v1989_v33  ;;  %v4100_v56 = vsub.f32 %v1876_v50, %v4072_v42  ;;  %v2007_v55 = vsub.f32 %v4055_v37, %v2006_v27  ;;  %v4111_v15 = vsub.f32 %v1875_v3, %v4086_v24 }
 0x135   :  { %1973 = vmatpush.msrb.mxu1 %v1972_v59  ;;  %2106 = vmatpush.msrb.mxu3 %v3888_v26  ;;  %v2013_v50 = vsub.f32 %v4070_v62, %v2012_v1  ;;  %v701_v32 = vadd.f32 %v700_v34, %v647_v10  ;;  %v2019_v3 = vsub.f32 %v4084_v51, %v2018_v25 }
 0x136   :  { %1719 = vmatpush.msra.mxu0 %v3804_v6  ;;  %2059 = vmatpush.msrb.mxu2 %v3936_v49  ;;  %v4102_v6 = vand.u32 4294901760, %v1874_v29  ;;  %v2024_v59 = vand.u32 4294901760, %v4100_v56  ;;  %v2008_v33 = vand.u32 4294901760, %v2007_v55  ;;  %v4133_v7 = vsub.f32 %v1873_v53, %v4113_v2  ;;  %v808_v53 = vpop.f32.mrf.mxu0 }
 0x137   :  { %1722 = vmatmul.f32.vlgmr.msra.gmra.mxu0 %v4642_v57  ;;  %1979 = vmatpush.msrb.mxu1 %v1978_v52  ;;  %v2030_v52 = vand.u32 4294901760, %v4111_v15  ;;  %v740_v16 = vadd.f32 %v739_v17, %v701_v32  ;;  %v2020_v57 = vand.u32 4294901760, %v2019_v3  ;;  %v845_v32 = vpop.f32.mrf.mxu1 }
 0x138   :  { %1910 = vmatpush.msrb.mxu0 %v3888_v26  ;;  %2108 = vmatpush.msrb.mxu3 %v3898_v14  ;;  %v4123_v0 = vsub.f32 %v1874_v29, %v4102_v6  ;;  %v2014_v29 = vand.u32 4294901760, %v2013_v50  ;;  %v2042_v10 = vand.u32 4294901760, %v4133_v7 }
 0x139   :  { %1985 = vmatpush.msrb.mxu1 %v1984_v63  ;;  %2062 = vmatpush.msrb.mxu2 %v3950_v4  ;;  %v2025_v63 = vsub.f32 %v4100_v56, %v2024_v59  ;;  %v2031_v44 = vsub.f32 %v4111_v15, %v2030_v52  ;;  %v809_v34 = vadd.f32 %v808_v53, %v740_v16 }
 0x13a   :  { %1912 = vmatpush.msrb.mxu0 %v3898_v14  ;;  %2110 = vmatpush.msrb.mxu3 %v3911_v41  ;;  %v2043_v50 = vsub.f32 %v4133_v7, %v2042_v10 }
 0x13b   :  { %1991 = vmatpush.msrb.mxu1 %v1990_v40  ;;  %2065 = vmatpush.msrb.mxu2 %v3969_v12  ;;  %v2036_v40 = vand.u32 4294901760, %v4123_v0  ;;  %v846_v17 = vadd.f32 %v845_v32, %v809_v34  ;;  %v1902_v12 = vld [vmem:[%s4546_s5 + $0xe8] sm:$0xff] }
 0x13c   :  { %1914 = vmatpush.msrb.mxu0 %v3911_v41  ;;  %2112 = vmatpush.msrb.mxu3 %v3924_v18 }
 0x13d   :  { %1997 = vmatpush.msrb.mxu1 %v1996_v21  ;;  %2068 = vmatpush.msrb.mxu2 %v3986_v31  ;;  %v2026_v21 = vand.u32 4294901760, %v2025_v63  ;;  %v2037_v55 = vsub.f32 %v4123_v0, %v2036_v40  ;;  %v1901_v31 = vld [vmem:[%s4546_s5 + $0xe0] sm:$0xff] }
 0x13e   :  { %1916 = vmatpush.msrb.mxu0 %v3924_v18  ;;  %2114 = vmatpush.msrb.mxu3 %v3938_v19 }
 0x13f   :  { %2003 = vmatpush.msrb.mxu1 %v2002_v60  ;;  %2071 = vmatpush.msrb.mxu2 %v3992_v58  ;;  %v2032_v60 = vand.u32 4294901760, %v2031_v44  ;;  %v2038_v3 = vand.u32 4294901760, %v2037_v55 }
 0x140   :  { %1918 = vmatpush.msrb.mxu0 %v3938_v19  ;;  %2116 = vmatpush.msrb.mxu3 %v3952_v9 }
 0x141   :  { %2009 = vmatpush.msrb.mxu1 %v2008_v33  ;;  %2074 = vmatpush.msrb.mxu2 %v4009_v8  ;;  %v886_v33 = vpop.f32.mrf.mxu2  ;;  %v987_v16 = vpop.f32.mrf.mxu3  ;;  %v1900_v8 = vld [vmem:[%s4546_s5 + $0xd8] sm:$0xff] }
 0x142   :  { %1920 = vmatpush.msrb.mxu0 %v3952_v9  ;;  %2118 = vmatpush.msrb.mxu3 %v3960_v46  ;;  %v887_v63 = vadd.f32 %v886_v33, %v846_v17  ;;  %v1896_v17 = vld [vmem:[%s4546_s5 + $0xb8] sm:$0xff] }
 0x143   :  { %2015 = vmatpush.msrb.mxu1 %v2014_v29  ;;  %2077 = vmatpush.msrb.mxu2 %v4039_v48  ;;  %v2044_v29 = vand.u32 4294901760, %v2043_v50  ;;  %v1904_v50 = vld [vmem:[%s4546_s5 + $0xf8] sm:$0xff]  ;;  %v4271_v48 = vand.u32 4294901760, %v1900_v8 }
 0x144   :  { %1922 = vmatpush.msrb.mxu0 %v3960_v46  ;;  %2120 = vmatpush.msrb.mxu3 %v3974_v5  ;;  %v988_v53 = vadd.f32 %v987_v16, %v887_v63 }
 0x145   :  { %2021 = vmatpush.msrb.mxu1 %v2020_v57  ;;  %2080 = vmatpush.msrb.mxu2 %v4055_v37 }
 0x146   :  { %1924 = vmatpush.msrb.mxu0 %v3974_v5  ;;  %2122 = vmatpush.msrb.mxu3 %v4003_v28 }
 0x147   :  { %2027 = vmatpush.msrb.mxu1 %v2026_v21  ;;  %2083 = vmatpush.msrb.mxu2 %v4070_v62  ;;  %v1080_v21 = vpop.f32.mrf.mxu1 }
 0x148   :  { %1926 = vmatpush.msrb.mxu0 %v4003_v28  ;;  %2124 = vmatpush.msrb.mxu3 %v4025_v13 }
 0x149   :  { %2033 = vmatpush.msrb.mxu1 %v2032_v60  ;;  %2086 = vmatpush.msrb.mxu2 %v4084_v51 }
 0x14a   :  { %1928 = vmatpush.msrb.mxu0 %v4025_v13  ;;  %2126 = vmatpush.msrb.mxu3 %v4041_v23 }
 0x14b   :  { %2039 = vmatpush.msrb.mxu1 %v2038_v3  ;;  %2089 = vmatpush.msrb.mxu2 %v4100_v56 }
 0x14c   :  { %1930 = vmatpush.msrb.mxu0 %v4041_v23  ;;  %2128 = vmatpush.msrb.mxu3 %v4057_v45 }
 0x14d   :  { %2045 = vmatpush.msrb.mxu1 %v2044_v29  ;;  %2092 = vmatpush.msrb.mxu2 %v4111_v15  ;;  %v1149_v55 = vpop.f32.mrf.mxu2 }
 0x14e   :  { %1932 = vmatpush.msrb.mxu0 %v4057_v45  ;;  %2130 = vmatpush.msrb.mxu3 %v4072_v42 }
 0x14f   :  { %2214 = vmatpush.msra.mxu1 %v3888_v26  ;;  %v1041_v57 = vpop.f32.mrf.mxu0  ;;  %2095 = vmatpush.msrb.mxu2 %v4123_v0 }
 0x150   :  { %1934 = vmatpush.msrb.mxu0 %v4072_v42  ;;  %v1042_v44 = vadd.f32 %v1041_v57, %v988_v53  ;;  %2132 = vmatpush.msrb.mxu3 %v4086_v24  ;;  %v1895_v53 = vld [vmem:[%s4546_s5 + $0xb0] sm:$0xff] }
 0x151   :  { %2216 = vmatpush.msra.mxu1 %v3898_v14  ;;  %2098 = vmatpush.msrb.mxu2 %v4133_v7  ;;  %v1186_v14 = vpop.f32.mrf.mxu3 }
 0x152   :  { %1936 = vmatpush.msrb.mxu0 %v4086_v24  ;;  %v1081_v26 = vadd.f32 %v1080_v21, %v1042_v44  ;;  %2134 = vmatpush.msrb.mxu3 %v4102_v6 }
 0x153   :  { %2218 = vmatpush.msra.mxu1 %v3911_v41 }
 0x154   :  { %1938 = vmatpush.msrb.mxu0 %v4102_v6  ;;  %v1150_v34 = vadd.f32 %v1149_v55, %v1081_v26  ;;  %2136 = vmatpush.msrb.mxu3 %v4113_v2  ;;  %v1894_v26 = vld [vmem:[%s4546_s5 + $0xa8] sm:$0xff] }
 0x155   :  { %2220 = vmatpush.msra.mxu1 %v3924_v18  ;;  %v4198_v18 = vand.u32 4294901760, %v1904_v50 }
 0x156   :  { %1940 = vmatpush.msrb.mxu0 %v4113_v2  ;;  %v1187_v60 = vadd.f32 %v1186_v14, %v1150_v34  ;;  %v4369_v14 = vand.u32 4294901760, %v1894_v26 }
 0x157   :  { %2222 = vmatpush.msra.mxu1 %v3938_v19  ;;  %v4206_v22 = vsub.f32 %v1904_v50, %v4198_v18  ;;  %2251 = vmatpush.msra.mxu2 %v4198_v18 }
 0x158   :  { %2147 = vmatpush.msra.mxu0 %v1952_v20  ;;  %v1871_v41 = vmax.f32 %v1187_v60, 0.0  ;;  %v1893_v60 = vld [vmem:[%s4546_s5 + $0xa0] sm:$0xff] }
 0x159   :  { %2224 = vmatpush.msra.mxu1 %v3952_v9  ;;  %v2293_v30 = vand.u32 4294901760, %v4206_v22 }
 0x15a   :  { %2151 = vmatpush.msra.mxu0 %v1958_v39  ;;  %v4200_v32 = vand.u32 4294901760, %v1871_v41 }
 0x15b   :  { %2226 = vmatpush.msra.mxu1 %v3960_v46  ;;  %v2294_v49 = vsub.f32 %v4206_v22, %v2293_v30  ;;  %v1903_v46 = vld [vmem:[%s4546_s5 + $0xf0] sm:$0xff] }
 0x15c   :  { %2155 = vmatpush.msra.mxu0 %v1964_v47  ;;  %v1942_v20 = vsub.f32 %v1871_v41, %v4200_v32  ;;  %2047 = vmatmul.f32.vlgmr.msrb.gmra.mxu1 %v4200_v32  ;;  %v4231_v47 = vand.u32 4294901760, %v1903_v46 }
 0x15d   :  { %2228 = vmatpush.msra.mxu1 %v3974_v5  ;;  %v2295_v4 = vand.u32 4294901760, %v2294_v49  ;;  %v1892_v49 = vld [vmem:[%s4546_s5 + $0x98] sm:$0xff] }
 0x15e   :  { %2159 = vmatpush.msra.mxu0 %v1970_v36  ;;  %v1943_v19 = vand.u32 4294901760, %v1942_v20  ;;  %2101 = vmatmul.f32.vlgmr.msrb.gmra.mxu2 %v1942_v20  ;;  %v4240_v5 = vsub.f32 %v1903_v46, %v4231_v47  ;;  %v4242_v36 = vand.u32 4294901760, %v1902_v12  ;;  %v1891_v46 = vld [vmem:[%s4546_s5 + $0x90] sm:$0xff] }
 0x15f   :  { %2230 = vmatpush.msra.mxu1 %v4003_v28  ;;  %2296 = vmatpush.msra.mxu3 %v2295_v4  ;;  %v4255_v28 = vand.u32 4294901760, %v1901_v31 }
 0x160   :  { %2163 = vmatpush.msra.mxu0 %v1976_v35  ;;  %v1944_v39 = vsub.f32 %v1942_v20, %v1943_v19  ;;  %2140 = vmatmul.f32.vlgmr.msrb.gmra.mxu3 %v1943_v19  ;;  %v2299_v58 = vand.u32 4294901760, %v4240_v5  ;;  %v4253_v35 = vsub.f32 %v1902_v12, %v4242_v36  ;;  %v4384_v19 = vsub.f32 %v1894_v26, %v4369_v14  ;;  %v1890_v12 = vld [vmem:[%s4546_s5 + $0x88] sm:$0xff] }
 0x161   :  { %2232 = vmatpush.msra.mxu1 %v4025_v13  ;;  %2253 = vmatpush.msra.mxu2 %v4231_v47 }
 0x162   :  { %2167 = vmatpush.msra.mxu0 %v1982_v11  ;;  %v1945_v9 = vand.u32 4294901760, %v1944_v39  ;;  %v2300_v11 = vsub.f32 %v4240_v5, %v2299_v58  ;;  %v2305_v13 = vand.u32 4294901760, %v4253_v35 }
 0x163   :  { %2234 = vmatpush.msra.mxu1 %v4041_v23  ;;  %2255 = vmatpush.msra.mxu2 %v4242_v36  ;;  %v1899_v23 = vld [vmem:[%s4546_s5 + $0xd0] sm:$0xff] }
 0x164   :  { %2171 = vmatpush.msra.mxu0 %v1988_v54  ;;  %v4269_v54 = vsub.f32 %v1901_v31, %v4255_v28  ;;  %v2306_v37 = vsub.f32 %v4253_v35, %v2305_v13  ;;  %v4291_v62 = vand.u32 4294901760, %v1899_v23  ;;  %v1889_v31 = vld [vmem:[%s4546_s5 + $0x80] sm:$0xff] }
 0x165   :  { %2236 = vmatpush.msra.mxu1 %v4057_v45  ;;  %1946 = vmatmul.f32.vlgmr.msrb.gmra.mxu0 %v1945_v9  ;;  %v4396_v9 = vand.u32 4294901760, %v1892_v49 }
 0x166   :  { %2175 = vmatpush.msra.mxu0 %v1994_v61  ;;  %2257 = vmatpush.msra.mxu2 %v4255_v28  ;;  %v2301_v61 = vand.u32 4294901760, %v2300_v11  ;;  %v2311_v45 = vand.u32 4294901760, %v4269_v54  ;;  %v4306_v51 = vsub.f32 %v1899_v23, %v4291_v62  ;;  %v2353_v11 = vand.u32 4294901760, %v4384_v19 }
 0x167   :  { %2238 = vmatpush.msra.mxu1 %v4072_v42  ;;  %v1898_v42 = vld [vmem:[%s4546_s5 + $0xc8] sm:$0xff]  ;;  %v4410_v23 = vand.u32 4294901760, %v1891_v46 }
 0x168   :  { %2179 = vmatpush.msra.mxu0 %v2000_v43  ;;  %v4285_v43 = vsub.f32 %v1900_v8, %v4271_v48  ;;  %2259 = vmatpush.msra.mxu2 %v4271_v48 }
 0x169   :  { %2240 = vmatpush.msra.mxu1 %v4086_v24  ;;  %2302 = vmatpush.msra.mxu3 %v2301_v61  ;;  %v2312_v24 = vsub.f32 %v4269_v54, %v2311_v45  ;;  %v4412_v61 = vand.u32 4294901760, %v1890_v12 }
 0x16a   :  { %2183 = vmatpush.msra.mxu0 %v2006_v27  ;;  %v2307_v27 = vand.u32 4294901760, %v2306_v37  ;;  %2261 = vmatpush.msra.mxu2 %v4291_v62 }
 0x16b   :  { %2242 = vmatpush.msra.mxu1 %v4102_v6  ;;  %v4300_v6 = vand.u32 4294901760, %v1898_v42 }
 0x16c   :  { %2187 = vmatpush.msra.mxu0 %v2012_v1  ;;  %v2317_v1 = vand.u32 4294901760, %v4285_v43  ;;  %2308 = vmatpush.msra.mxu3 %v2307_v27  ;;  %v4417_v27 = vsub.f32 %v1892_v49, %v4396_v9 }
 0x16d   :  { %2244 = vmatpush.msra.mxu1 %v4113_v2  ;;  %v2313_v2 = vand.u32 4294901760, %v2312_v24  ;;  %v4316_v3 = vsub.f32 %v1898_v42, %v4300_v6  ;;  %2263 = vmatpush.msra.mxu2 %v4300_v6  ;;  %v4420_v24 = vand.u32 4294901760, %v1889_v31 }
 0x16e   :  { %2191 = vmatpush.msra.mxu0 %v2018_v25  ;;  %2246 = vmatmul.f32.vlgmr.msra.gmra.mxu1 %v4200_v32  ;;  %v1897_v25 = vld [vmem:[%s4546_s5 + $0xc0] sm:$0xff]  ;;  %v2318_v33 = vsub.f32 %v4285_v43, %v2317_v1 }
 0x16f   :  { %2447 = vmatpush.msrb.mxu1 %v4198_v18  ;;  %v4318_v56 = vand.u32 4294901760, %v1897_v25  ;;  %2314 = vmatpush.msra.mxu3 %v2313_v2  ;;  %v2329_v63 = vand.u32 4294901760, %v4316_v3  ;;  %v4427_v2 = vsub.f32 %v1891_v46, %v4410_v23 }
 0x170   :  { %2195 = vmatpush.msra.mxu0 %v2024_v59  ;;  %v2323_v59 = vand.u32 4294901760, %v4306_v51  ;;  %v2319_v29 = vand.u32 4294901760, %v2318_v33  ;;  %v4430_v33 = vsub.f32 %v1890_v12, %v4412_v61 }
 0x171   :  { %2449 = vmatpush.msrb.mxu1 %v4231_v47  ;;  %v4330_v16 = vsub.f32 %v1897_v25, %v4318_v56  ;;  %2265 = vmatpush.msra.mxu2 %v4318_v56  ;;  %v2330_v57 = vsub.f32 %v4316_v3, %v2329_v63  ;;  %v2354_v25 = vsub.f32 %v4384_v19, %v2353_v11 }
 0x172   :  { %2199 = vmatpush.msra.mxu0 %v2030_v52  ;;  %v2324_v15 = vsub.f32 %v4306_v51, %v2323_v59  ;;  %v4338_v52 = vand.u32 4294901760, %v1896_v17  ;;  %2320 = vmatpush.msra.mxu3 %v2319_v29  ;;  %v2365_v29 = vand.u32 4294901760, %v4417_v27 }
 0x173   :  { %2451 = vmatpush.msrb.mxu1 %v4242_v36  ;;  %v2335_v0 = vand.u32 4294901760, %v4330_v16  ;;  %v2331_v55 = vand.u32 4294901760, %v2330_v57  ;;  %v2371_v57 = vand.u32 4294901760, %v4427_v2 }
 0x174   :  { %2203 = vmatpush.msra.mxu0 %v2036_v40  ;;  %v4348_v40 = vand.u32 4294901760, %v1895_v53  ;;  %v2325_v44 = vand.u32 4294901760, %v2324_v15  ;;  %v4354_v21 = vsub.f32 %v1896_v17, %v4338_v52  ;;  %2267 = vmatpush.msra.mxu2 %v4338_v52  ;;  %v4438_v15 = vsub.f32 %v1889_v31, %v4420_v24 }
 0x175   :  { %2453 = vmatpush.msrb.mxu1 %v4255_v28  ;;  %v2336_v34 = vsub.f32 %v4330_v16, %v2335_v0 }
 0x176   :  { %2207 = vmatpush.msra.mxu0 %v2042_v10  ;;  %v4365_v7 = vsub.f32 %v1895_v53, %v4348_v40  ;;  %2326 = vmatpush.msra.mxu3 %v2325_v44  ;;  %v2341_v10 = vand.u32 4294901760, %v4354_v21  ;;  %v2355_v53 = vand.u32 4294901760, %v2354_v25  ;;  %v2377_v44 = vand.u32 4294901760, %v4430_v33 }
 0x177   :  { %2209 = vmatmul.f32.vlgmr.msra.gmra.mxu0 %v4200_v32  ;;  %2455 = vmatpush.msrb.mxu1 %v4271_v48  ;;  %v2337_v41 = vand.u32 4294901760, %v2336_v34  ;;  %v4376_v32 = vand.u32 4294901760, %v1893_v60  ;;  %v2383_v34 = vand.u32 4294901760, %v4438_v15 }
 0x178   :  { %2394 = vmatpush.msrb.mxu0 %v4206_v22  ;;  %v2347_v50 = vand.u32 4294901760, %v4365_v7  ;;  %2269 = vmatpush.msra.mxu2 %v4348_v40  ;;  %v2342_v20 = vsub.f32 %v4354_v21, %v2341_v10  ;;  %v1227_v22 = vpop.f32.mrf.mxu0 }
 0x179   :  { %2457 = vmatpush.msrb.mxu1 %v4291_v62  ;;  %2332 = vmatpush.msra.mxu3 %v2331_v55  ;;  %v4394_v4 = vsub.f32 %v1893_v60, %v4376_v32  ;;  %v2366_v55 = vsub.f32 %v4417_v27, %v2365_v29  ;;  %v2372_v60 = vsub.f32 %v4427_v2, %v2371_v57 }
 0x17a   :  { %2397 = vmatpush.msrb.mxu0 %v4240_v5  ;;  %v2348_v39 = vsub.f32 %v4365_v7, %v2347_v50  ;;  %2271 = vmatpush.msra.mxu2 %v4369_v14  ;;  %v2343_v8 = vand.u32 4294901760, %v2342_v20  ;;  %v1382_v5 = vpop.f32.mrf.mxu2 }
 0x17b   :  { %2459 = vmatpush.msrb.mxu1 %v4300_v6  ;;  %2338 = vmatpush.msra.mxu3 %v2337_v41  ;;  %v2359_v42 = vand.u32 4294901760, %v4394_v4  ;;  %v2378_v41 = vsub.f32 %v4430_v33, %v2377_v44  ;;  %v2367_v20 = vand.u32 4294901760, %v2366_v55  ;;  %v2373_v49 = vand.u32 4294901760, %v2372_v60 }
 0x17c   :  { %2400 = vmatpush.msrb.mxu0 %v4253_v35  ;;  %v2349_v37 = vand.u32 4294901760, %v2348_v39  ;;  %2273 = vmatpush.msra.mxu2 %v4376_v32  ;;  %v2384_v39 = vsub.f32 %v4438_v15, %v2383_v34 }
 0x17d   :  { %2461 = vmatpush.msrb.mxu1 %v4318_v56  ;;  %2344 = vmatpush.msra.mxu3 %v2343_v8  ;;  %v2360_v17 = vsub.f32 %v4394_v4, %v2359_v42  ;;  %v2379_v46 = vand.u32 4294901760, %v2378_v41 }
 0x17e   :  { %2403 = vmatpush.msrb.mxu0 %v4269_v54  ;;  %2275 = vmatpush.msra.mxu2 %v4396_v9  ;;  %v2385_v12 = vand.u32 4294901760, %v2384_v39 }
 0x17f   :  { %2463 = vmatpush.msrb.mxu1 %v4338_v52  ;;  %2350 = vmatpush.msra.mxu3 %v2349_v37  ;;  %v2361_v26 = vand.u32 4294901760, %v2360_v17 }
 0x180   :  { %2406 = vmatpush.msrb.mxu0 %v4285_v43  ;;  %2277 = vmatpush.msra.mxu2 %v4410_v23 }
 0x181   :  { %2465 = vmatpush.msrb.mxu1 %v4348_v40  ;;  %2356 = vmatpush.msra.mxu3 %v2355_v53 }
 0x182   :  { %2409 = vmatpush.msrb.mxu0 %v4306_v51  ;;  %2279 = vmatpush.msra.mxu2 %v4412_v61 }
 0x183   :  { %2467 = vmatpush.msrb.mxu1 %v4369_v14  ;;  %2362 = vmatpush.msra.mxu3 %v2361_v26 }
 0x184   :  { %2412 = vmatpush.msrb.mxu0 %v4316_v3  ;;  %2281 = vmatpush.msra.mxu2 %v4420_v24 }
 0x185   :  { %2469 = vmatpush.msrb.mxu1 %v4376_v32  ;;  %2368 = vmatpush.msra.mxu3 %v2367_v20 }
 0x186   :  { %2415 = vmatpush.msrb.mxu0 %v4330_v16  ;;  %2488 = vmatpush.msrb.mxu2 %v2293_v30 }
 0x187   :  { %2471 = vmatpush.msrb.mxu1 %v4396_v9  ;;  %2374 = vmatpush.msra.mxu3 %v2373_v49 }
 0x188   :  { %2418 = vmatpush.msrb.mxu0 %v4354_v21  ;;  %2492 = vmatpush.msrb.mxu2 %v2299_v58  ;;  %v1421_v58 = vpop.f32.mrf.mxu3 }
 0x189   :  { %2473 = vmatpush.msrb.mxu1 %v4410_v23  ;;  %2380 = vmatpush.msra.mxu3 %v2379_v46 }
 0x18a   :  { %2421 = vmatpush.msrb.mxu0 %v4365_v7  ;;  %2496 = vmatpush.msrb.mxu2 %v2305_v13 }
 0x18b   :  { %2475 = vmatpush.msrb.mxu1 %v4412_v61  ;;  %2386 = vmatpush.msra.mxu3 %v2385_v12 }
 0x18c   :  { %2424 = vmatpush.msrb.mxu0 %v4384_v19  ;;  %2500 = vmatpush.msrb.mxu2 %v2311_v45 }
 0x18d   :  { %2555 = vmatpush.msrb.mxu3 %v4198_v18  ;;  %2477 = vmatpush.msrb.mxu1 %v4420_v24  ;;  %v504_v18 = vperm.slane %v4022_v38, 1  ;;  %v1328_v38 = vpop.f32.mrf.mxu1 }
 0x18e   :  { %2427 = vmatpush.msrb.mxu0 %v4394_v4  ;;  %2504 = vmatpush.msrb.mxu2 %v2317_v1 }
 0x18f   :  { %2557 = vmatpush.msrb.mxu3 %v4231_v47  ;;  %v1228_v30 = vadd.f32 %v1227_v22, %v504_v18 }
 0x190   :  { %2430 = vmatpush.msrb.mxu0 %v4417_v27  ;;  %2508 = vmatpush.msrb.mxu2 %v2323_v59 }
 0x191   :  { %2559 = vmatpush.msrb.mxu3 %v4242_v36  ;;  %v1329_v47 = vadd.f32 %v1328_v38, %v1228_v30  ;;  %v1568_v45 = vpop.f32.mrf.mxu2 }
 0x192   :  { %2433 = vmatpush.msrb.mxu0 %v4427_v2  ;;  %2512 = vmatpush.msrb.mxu2 %v2329_v63 }
 0x193   :  { %2561 = vmatpush.msrb.mxu3 %v4255_v28  ;;  %v1383_v36 = vadd.f32 %v1382_v5, %v1329_v47  ;;  %v1490_v35 = vpop.f32.mrf.mxu0 }
 0x194   :  { %2436 = vmatpush.msrb.mxu0 %v4430_v33  ;;  %2516 = vmatpush.msrb.mxu2 %v2335_v0 }
 0x195   :  { %2563 = vmatpush.msrb.mxu3 %v4271_v48  ;;  %v1422_v28 = vadd.f32 %v1421_v58, %v1383_v36  ;;  %v1527_v54 = vpop.f32.mrf.mxu1 }
 0x196   :  { %2439 = vmatpush.msrb.mxu0 %v4438_v15  ;;  %2520 = vmatpush.msrb.mxu2 %v2341_v10 }
 0x197   :  { %2565 = vmatpush.msrb.mxu3 %v4291_v62  ;;  %v1491_v13 = vadd.f32 %v1490_v35, %v1422_v28  ;;  %v1669_v62 = vpop.f32.mrf.mxu3 }
 0x198   :  { %2524 = vmatpush.msrb.mxu2 %v2347_v50  ;;  %v2597_v50 = vld [vmem:[%s4548_s7] sm:$0xff]  ;;  %s2738_s7 = smov [#allocation5]  }
 0x199   :  { %2567 = vmatpush.msrb.mxu3 %v4300_v6  ;;  %v1528_v48 = vadd.f32 %v1527_v54, %v1491_v13  ;;  %2599 = vrot.lane.b32.xlu0 %v2597_v50, %s2736_s18  ;;  %s2650_s21 = sshll.u32 %s2738_s7, 4  ;;  %s2651_s21 = int_to_ptr.vmem [resolvable:$true] %s2650_s21 }
 0x19a   :  { %2528 = vmatpush.msrb.mxu2 %v2353_v11 }
 0x19b   :  { %2569 = vmatpush.msrb.mxu3 %v4318_v56  ;;  %v1569_v43 = vadd.f32 %v1568_v45, %v1528_v48  ;;  %v2610_v48 = vmul.f32 %v2597_v50, %v2597_v50 }
 0x19c   :  { %2532 = vmatpush.msrb.mxu2 %v2359_v42 }
 0x19d   :  { %2571 = vmatpush.msrb.mxu3 %v4338_v52  ;;  %v1670_v1 = vadd.f32 %v1669_v62, %v1569_v43  ;;  %v2611_v45 = vmul.f32 -0.5, %v2610_v48 }
 0x19e   :  { %2536 = vmatpush.msrb.mxu2 %v2365_v29 }
 0x19f   :  { %2573 = vmatpush.msrb.mxu3 %v4348_v40 }
 0x1a0   :  { %2540 = vmatpush.msrb.mxu2 %v2371_v57 }
 0x1a1   :  { %2575 = vmatpush.msrb.mxu3 %v4369_v14 }
 0x1a2   :  { %2544 = vmatpush.msrb.mxu2 %v2377_v44 }
 0x1a3   :  { %2577 = vmatpush.msrb.mxu3 %v4376_v32  ;;  %v2670_v32 = vld [vmem:[%s4547_s6] ss:$0 sm:$0xff]  ;;  %s2737_s6 = smov 120  }
 0x1a4   :  { %2548 = vmatpush.msrb.mxu2 %v2383_v34 }
 0x1a5   :  { %2579 = vmatpush.msrb.mxu3 %v4396_v9 }
 0x1a7   :  { %2581 = vmatpush.msrb.mxu3 %v4410_v23 }
 0x1a9   :  { %2583 = vmatpush.msrb.mxu3 %v4412_v61 }
 0x1ab   :  { %2585 = vmatpush.msrb.mxu3 %v4420_v24  ;;  %v1762_v3 = vpop.f32.mrf.mxu1 }
 0x1b3   :  { %v1831_v59 = vpop.f32.mrf.mxu2 }
 0x1b4   :  { %v1723_v6 = vpop.f32.mrf.mxu0 }
 0x1b5   :  { %v1724_v51 = vadd.f32 %v1723_v6, %v1670_v1 }
 0x1b6   :  { %v1868_v16 = vpop.f32.mrf.mxu3 }
 0x1b7   :  { %v1763_v56 = vadd.f32 %v1762_v3, %v1724_v51 }
 0x1b9   :  { %v1832_v63 = vadd.f32 %v1831_v59, %v1763_v56 }
 0x1bb   :  { %v1869_v52 = vadd.f32 %v1868_v16, %v1832_v63 }
 0x1bd   :  { %v1872_v0 = vmax.f32 %v1869_v52, 0.0 }
 0x1bf   :  { %v2282_v40 = vand.u32 4294901760, %v1872_v0 }
 0x1c1   :  { %v2283_v21 = vsub.f32 %v1872_v0, %v2282_v40  ;;  %2388 = vmatmul.f32.vlgmr.msra.gmra.mxu3 %v2282_v40 }
 0x1c3   :  { %v2284_v7 = vand.u32 4294901760, %v2283_v21  ;;  %2442 = vmatmul.f32.vlgmr.msrb.gmra.mxu0 %v2283_v21 }
 0x1c5   :  { %v2285_v10 = vsub.f32 %v2283_v21, %v2284_v7  ;;  %2481 = vmatmul.f32.vlgmr.msrb.gmra.mxu1 %v2284_v7 }
 0x1c7   :  { %v2286_v14 = vand.u32 4294901760, %v2285_v10 }
 0x1c9   :  { %2287 = vmatmul.f32.vlgmr.msra.gmra.mxu2 %v2286_v14  ;;  %2587 = vmatmul.f32.vlgmr.msrb.gmra.mxu3 %v2282_v40 }
 0x1d1   :  { %2550 = vmatmul.f32.vlgmr.msrb.gmra.mxu2 %v2282_v40 }
 0x1d9   :  { %v2048_v9 = vpop.f32.mrf.mxu1 }
 0x1e1   :  { %v2102_v8 = vpop.f32.mrf.mxu2 }
 0x1e2   :  { %v1947_v19 = vpop.f32.mrf.mxu0 }
 0x1e3   :  { %v1948_v4 = vadd.f32 %v2670_v32, %v1947_v19  ;;  %v2141_v23 = vpop.f32.mrf.mxu3 }
 0x1e5   :  { %v2049_v31 = vadd.f32 %v2048_v9, %v1948_v4 }
 0x1e7   :  { %v2103_v11 = vadd.f32 %v2102_v8, %v2049_v31 }
 0x1e9   :  { %v2142_v61 = vadd.f32 %v2141_v23, %v2103_v11 }
 0x1eb   :  { %v2247_v27 = vpop.f32.mrf.mxu1 }
 0x1f4   :  { %v2210_v37 = vpop.f32.mrf.mxu0 }
 0x1f5   :  { %v2211_v42 = vadd.f32 %v2210_v37, %v2142_v61 }
 0x1f7   :  { %v2248_v24 = vadd.f32 %v2247_v27, %v2211_v42 }
 0x20b   :  { %v2600_v46 = vpop.permute.xlu0 %2599 }
 0x240   :  { %v2443_v29 = vpop.f32.mrf.mxu0 }
 0x242   :  { %v2482_v53 = vpop.f32.mrf.mxu1 }
 0x244   :  { %v2389_v25 = vpop.f32.mrf.mxu3 }
 0x24c   :  { %v2288_v2 = vpop.f32.mrf.mxu2  ;;  %v2588_v55 = vpop.f32.mrf.mxu3 }
 0x24d   :  { %v2289_v33 = vadd.f32 %v2288_v2, %v2248_v24 }
 0x24f   :  { %v2390_v17 = vadd.f32 %v2389_v25, %v2289_v33 }
 0x251   :  { %v2444_v15 = vadd.f32 %v2443_v29, %v2390_v17 }
 0x253   :  { %v2483_v57 = vadd.f32 %v2482_v53, %v2444_v15 }
 0x254   :  { %v2551_v44 = vpop.f32.mrf.mxu2 }
 0x255   :  { %v2552_v26 = vadd.f32 %v2551_v44, %v2483_v57 }
 0x257   :  { %v2589_v34 = vadd.f32 %v2588_v55, %v2552_v26 }
 0x259   :  { %v2662_v60 = vclamps-f32 %v2589_v34, 9.0  ;;  %v2593_v41 = vmax.f32 %v2589_v34, -5.0 }
 0x25b   :  { %v2594_v20 = vmin.f32 %v2593_v41, 2.0  ;;  %2671 = vtanh.f32 %v2662_v60 }
 0x25d   :  { %2613 = vrot.lane.b32.xlu1 %v2594_v20, %s2737_s6  ;;  %v2595_v49 = vmul.f32 1.442695, %v2594_v20 }
 0x25f   :  { %2673 = vpow2.f32 %v2595_v49 }
 0x261   :  { %v2672_v39 = vpop.eup %2671 }
 0x262   :  { %2637 = vrot.lane.b32.xlu2 %v2672_v39, %s2736_s18 }
 0x265   :  { %v2674_v12 = vpop.eup %2673 }
 0x266   :  { %v2602_v18 = vmul.f32 %v2674_v12, %v2600_v46 }
 0x268   :  { %2604 = vrot.lane.b32.xlu0 %v2602_v18, %s2737_s6 }
 0x2bc   :  { %v2638_v58 = vpop.permute.xlu2 %2637 }
 0x2cf   :  { %v2614_v62 = vpop.permute.xlu1 %2613 }
 0x2d0   :  { %v2616_v51 = vsub.f32 %v2611_v45, %v2614_v62 }
 0x2d2   :  { %v2663_v63 = vadd.f32 -0.9189385, %v2616_v51 }
 0x2da   :  { %v2605_v22 = vpop.permute.xlu0 %2604 }
 0x2db   :  { %v2607_v30 = vadd.f32 %v2662_v60, %v2605_v22 }
 0x2dd   :  { %2675 = vtanh.f32 %v2607_v30  ;;  %v2618_v38 = vmul.f32 -2.0, %v2607_v30  ;;  %v2628_v3 = vsub.f32 0.6931472, %v2607_v30 }
 0x2df   :  { %v2620_v47 = vand.u32 2147483647, %v2618_v38  ;;  %v2619_v1 = vmax.f32 %v2618_v38, 0.0 }
 0x2e1   :  { %v2621_v5 = vsub.f32 0.0, %v2620_v47 }
 0x2e3   :  { %v2676_v36 = vpop.eup %2675  ;;  %v2622_v35 = vmul.f32 1.442695, %v2621_v5 }
 0x2e4   :  { %v2640_v28 = vsel %vm2632_vm1, %v2676_v36, %v2638_v58 }
 0x2e5   :  { %2677 = vpow2.f32 %v2622_v35 }
 0x2eb   :  { %v2678_v13 = vpop.eup %2677 }
 0x2ec   :  { %v2624_v54 = vadd.f32 1.0, %v2678_v13 }
 0x2ee   :  { %2679 = vlog2.f32 %v2624_v54 }
 0x2f4   :  { %v2680_v43 = vpop.eup %2679 }
 0x2f5   :  { %v2626_v6 = vmul.f32 0.6931472, %v2680_v43 }
 0x2f7   :  { %v2627_v56 = vadd.f32 %v2626_v6, %v2619_v1 }
 0x2f9   :  { %v2629_v59 = vsub.f32 %v2628_v3, %v2627_v56 }
 0x2fb   :  { %v2630_v16 = vmul.f32 2.0, %v2629_v59 }
 0x2fd   :  { %v2631_v52 = vsub.f32 %v2663_v63, %v2630_v16 }
 0x2ff   :  { %v2633_v0 = vsel %vm2632_vm1, %v2631_v52, 0.0 }
 0x300   :  { %2634 = vadd.xlane.f32.xlu1 %v2633_v0 }
 0x373   :  { %v2635_v40 = vpop.xlane.xlu1 %2634 }
 0x374   :  { %v2642_v21 = vsel %vm2641_vm2, %v2640_v28, %v2635_v40 }
 0x375   :  { %2644 = vst.msk [vmem:[#allocation5] sm:$0xff] %vm2643_vm3, %v2642_v21 }
 0x376   :  { %2655 = dma.vmem_to_hbm [thread:$0]  %s2651_s21, 128, %s2653_s24, [#allocation4]  }
 0x377   :  { %2731 = dma.done.wait [#allocation4], 128  }
 0x378   :  { %2732 = vsyncadd [#allocation4], 4294967168 }
 0x379   :  { %2660 = vsyncpa [#allocation3], 1 }
 0x37a   :  { %2661 = vsyncpa [#allocation4], 1 }

</bundles_post_ra>
